<compile_context>
chip_gen: v7x
topology: tpu7x:2x2x1
jax: 0.10.0
libtpu: 0.0.40
codegen_flags: <defaults>
</compile_context>

<pallas_src>
import functools

import numpy as np
import jax
import jax.numpy as jnp
from jax.experimental import pallas as pl
from jax.experimental.pallas import tpu as pltpu


MXU_DTYPE = jnp.bfloat16   # bf16-native MXU on v5e/v6e/v7x; epilogue stays f32.


# ----------------------------------------------------------------------------
# Pallas kernel: fully fused GCN stack
# ----------------------------------------------------------------------------
def _fused_gcn_kernel(n_res_blocks, b_tile, n_joints,
                      x_ref,
                      w0_in_ref, w1_in_ref, b_in_ref, a_in_ref, d_in_ref,
                      w0_h_ref, w1_h_ref, b_h_ref, a_h_ref, d_h_ref,
                      w0_out_ref, w1_out_ref, b_out_ref, a_out_ref, d_out_ref,
                      o_ref):
    """One grid step processes a (rows = b_tile*J, C) activation tile through all layers.

    Per layer (SemGraphConv with eval-mode BN folded into weights):
      h0  = x @ W0'                      # bf16 MXU matmul, f32 accumulation
      h1  = x @ W1'                      # bf16 MXU matmul, f32 accumulation
      y   = diag(adj) * h0               # per-joint scale (VPU, f32)
          + adj_offdiag @ h1             # shared (J,J) adjacency, batched MXU matmul
          + b'
      y   = relu(y)                      # hidden layers only
    """
    rows = b_tile * n_joints

    def layer(x, w0, w1, bias, a_off, dvec, relu):
        # x: (rows, Cin) f32 | w0,w1: (Cin, D) bf16 | bias: (1, D) f32
        # a_off: (J, J) bf16 | dvec: (J, 1) f32
        dout = bias.shape[-1]
        xb = x.astype(w0.dtype)
        h0 = jnp.dot(xb, w0, preferred_element_type=jnp.float32)       # (rows, D)
        h1 = jnp.dot(xb, w1, preferred_element_type=jnp.float32)       # (rows, D)
        # (rows, D) -> (b_tile, J, D); free relabel when J % 8 == 0 (pad J at prod).
        h0 = h0.reshape(b_tile, n_joints, dout)
        h1 = h1.reshape(b_tile, n_joints, dout)
        # Shared (J,J) off-diagonal adjacency applied per batch element: one batched
        # MXU matmul -- no batch-block-diagonal matrix, no structural-zero FLOPs.
        a_b = jnp.broadcast_to(a_off, (b_tile, n_joints, n_joints))
        y_off = jnp.einsum("bij,bjd->bid", a_b, h1.astype(a_off.dtype),
                           preferred_element_type=jnp.float32)
        # diag(adj) term is a per-joint scale on the W0 path (VPU, f32).
        y = dvec.reshape(1, n_joints, 1) * h0 + y_off + bias.reshape(1, 1, dout)
        if relu:
            y = jnp.maximum(y, 0.0)
        return y.reshape(rows, dout)

    # gconv_input
    x = layer(x_ref[...], w0_in_ref[...], w1_in_ref[...], b_in_ref[...],
              a_in_ref[...], d_in_ref[...], True)

    # n_layers * _ResGraphConv (2 gconvs each, residual added after the second ReLU).
    # Python-unrolled (default n_layers=3 -> 6 gconvs); for much deeper stacks switch to
    # lax.fori_loop with dynamic w*_h_ref[l] indexing to bound code size / vreg pressure.
    for blk in range(n_res_blocks):
        res = x
        for l in (2 * blk, 2 * blk + 1):
            x = layer(x, w0_h_ref[l], w1_h_ref[l], b_h_ref[l],
                      a_h_ref[l], d_h_ref[l], True)
        x = x + res

    # gconv_output (no BN, no ReLU)
    y = layer(x, w0_out_ref[...], w1_out_ref[...], b_out_ref[...],
              a_out_ref[...], d_out_ref[...], False)
    o_ref[...] = y.astype(o_ref.dtype)


def fused_gcn(x_flat, fp, *, b_tile=None, vmem_limit_bytes=None):
    """Run the fused GCN stack.  x_flat: (B*J, 3) f32, batch-major -> (B*J, 3) f32."""
    BJ, cin = x_flat.shape
    J = fp["a_in"].shape[0]
    assert BJ % J == 0
    B = BJ // J
    if b_tile is None:
        b_tile = B                      # single tile at toy sizes
    assert B % b_tile == 0
    n_tiles = B // b_tile
    rows = b_tile * J
    if n_tiles > 1:
        # (8,128) rule on the (rows, cin)/(rows, cout) tiles: sublane dim must be a
        # multiple of 8 when actually tiled (pad J 23->24 or pick b_tile % 8 == 0).
        assert rows % 8 == 0, "pick b_tile so that b_tile * n_joints is a multiple of 8"
    cout = fp["b_out"].shape[-1]
    n_hid = fp["w0_hid"].shape[0]
    kern = functools.partial(_fused_gcn_kernel, n_hid // 2, b_tile, J)

    c2 = lambda i: (0, 0)
    c3 = lambda i: (0, 0, 0)
    const_inputs = [
        ("w0_in", c2), ("w1_in", c2), ("b_in", c2), ("a_in", c2), ("d_in", c2),
        ("w0_hid", c3), ("w1_hid", c3), ("b_hid", c3), ("a_hid", c3), ("d_hid", c3),
        ("w0_out", c2), ("w1_out", c2), ("b_out", c2), ("a_out", c2), ("d_out", c2),
    ]
    in_specs = [pl.BlockSpec((rows, cin), lambda i: (i, 0))]
    in_specs += [pl.BlockSpec(fp[name].shape, imap) for name, imap in const_inputs]

    if vmem_limit_bytes is None:
        # Resident layer params (double-buffered by default) + activation tiles.
        # Scoped VMEM defaults are only 16 MiB (v5e) / 32 MiB (v6e, v7x); v7x has
        # 64 MiB physical, so cap the request well below that.
        resident = sum(int(np.prod(fp[n].shape)) * fp[n].dtype.itemsize
                       for n, _ in const_inputs)
        act = (rows * cin + rows * cout) * 4
        vmem_limit_bytes = int(min(max(2 * (resident + act) + (8 << 20), 32 << 20),
                                   48 << 20))

    return pl.pallas_call(
        kern,
        out_shape=jax.ShapeDtypeStruct((BJ, cout), jnp.float32),
        grid=(n_tiles,),
        in_specs=in_specs,
        out_specs=pl.BlockSpec((rows, cout), lambda i: (i, 0)),
        compiler_params=pltpu.CompilerParams(
            dimension_semantics=("parallel",),
            vmem_limit_bytes=vmem_limit_bytes),
    )(x_flat, *[fp[name] for name, _ in const_inputs])


# ----------------------------------------------------------------------------
# Parameter setup (plain JAX / numpy glue)
# ----------------------------------------------------------------------------
def _xavier_uniform(key, shape):
    fan_in, fan_out = shape[-2], shape[-1]
    limit = float(np.sqrt(6.0 / (fan_in + fan_out)))
    return jax.random.uniform(key, shape, jnp.float32, -limit, limit)


def _adj_from_e(mask, e):
    """Reproduce SemGraphConv's adjacency construction (softmax over learned `e`)."""
    rows, cols = np.nonzero(mask)   # row-major, same order as torch .nonzero()
    adj = jnp.full(mask.shape, -9e15, jnp.float32).at[rows, cols].set(e)
    return jax.nn.softmax(adj, axis=1)


def make_graphconv(key, cin, cout, mask, with_bn):
    nnz = int(mask.sum())
    kw, kb, ke, kg, kbeta = jax.random.split(key, 5)
    w = _xavier_uniform(kw, (2, cin, cout))
    stdv = 1.0 / float(np.sqrt(cout))
    bias = jax.random.uniform(kb, (cout,), jnp.float32, -stdv, stdv)
    # e is init to 1 in the original module; add tiny deterministic perturbation
    e = jnp.ones((nnz,), jnp.float32) + 0.1 * jax.random.normal(ke, (nnz,), jnp.float32)
    p = {"w0": w[0], "w1": w[1], "bias": bias, "adj": _adj_from_e(mask, e)}
    if with_bn:
        # eval-mode BatchNorm1d with deterministic params
        gamma = 1.0 + 0.1 * jax.random.normal(kg, (cout,), jnp.float32)
        beta = 0.1 * jax.random.normal(kbeta, (cout,), jnp.float32)
        running_mean = jnp.zeros((cout,), jnp.float32)
        running_var = jnp.ones((cout,), jnp.float32)
        scale = gamma / jnp.sqrt(running_var + 1e-5)
        shift = beta - running_mean * scale
        p["scale"], p["shift"] = scale, shift
    return p


def build_posegcn_params(key, n_joints, hid_dim, n_layers, input_dim=3):
    # Synthetic "skeleton": a simple chain (stand-in for the rat23 limb list).
    edges = [(i, i + 1) for i in range(n_joints - 1)]
    mask = np.zeros((n_joints, n_joints), dtype=bool)
    for i, j in edges:
        mask[i, j] = True
        mask[j, i] = True
    np.fill_diagonal(mask, True)   # build_adj_mx_from_edges adds self-loops

    keys = jax.random.split(key, 2 + 2 * n_layers)
    params = {"input": make_graphconv(keys[0], input_dim, hid_dim, mask, with_bn=True)}
    res_blocks = []
    for l in range(n_layers):
        p1 = make_graphconv(keys[1 + 2 * l], hid_dim, hid_dim, mask, with_bn=True)
        p2 = make_graphconv(keys[2 + 2 * l], hid_dim, hid_dim, mask, with_bn=True)
        res_blocks.append((p1, p2))
    params["res_blocks"] = res_blocks
    params["output"] = make_graphconv(keys[-1], hid_dim, input_dim, mask, with_bn=False)
    return params


def _fold_layer(p):
    """Fold eval-mode BN into W/b; split adjacency into off-diag (bf16) + diag vector (f32)."""
    w0, w1, bias = p["w0"], p["w1"], p["bias"]
    if "scale" in p:
        w0 = w0 * p["scale"][None, :]
        w1 = w1 * p["scale"][None, :]
        bias = bias * p["scale"] + p["shift"]
    adj = p["adj"]
    J = adj.shape[0]
    eye = jnp.eye(J, dtype=adj.dtype)
    dvec = jnp.diag(adj).reshape(J, 1).astype(jnp.float32)       # (adj * I) -> per-joint scale
    a_off = (adj * (1.0 - eye)).astype(MXU_DTYPE)                # shared (J, J) off-diag, bf16
    return (w0.astype(MXU_DTYPE), w1.astype(MXU_DTYPE),
            bias.reshape(1, -1).astype(jnp.float32), a_off, dvec)


def prepare_fused_gcn_params(gcn_params):
    fp = {}
    (fp["w0_in"], fp["w1_in"], fp["b_in"], fp["a_in"], fp["d_in"]) = \
        _fold_layer(gcn_params["input"])
    cols = {k: [] for k in ("w0", "w1", "b", "a", "d")}
    for p1, p2 in gcn_params["res_blocks"]:
        for p in (p1, p2):
            w0, w1, b, a, d = _fold_layer(p)
            cols["w0"].append(w0); cols["w1"].append(w1); cols["b"].append(b)
            cols["a"].append(a); cols["d"].append(d)
    fp["w0_hid"] = jnp.stack(cols["w0"])     # (2*n_layers, hid, hid)  bf16
    fp["w1_hid"] = jnp.stack(cols["w1"])     # (2*n_layers, hid, hid)  bf16
    fp["b_hid"] = jnp.stack(cols["b"])       # (2*n_layers, 1, hid)    f32
    fp["a_hid"] = jnp.stack(cols["a"])       # (2*n_layers, J, J)      bf16
    fp["d_hid"] = jnp.stack(cols["d"])       # (2*n_layers, J, 1)      f32
    (fp["w0_out"], fp["w1_out"], fp["b_out"], fp["a_out"], fp["d_out"]) = \
        _fold_layer(gcn_params["output"])
    return fp


def build_pose_generator_params(key, c_in, n_joints, feat_dim=16):
    k1, k2, k3, k4 = jax.random.split(key, 4)
    return {
        "w_feat": 0.5 * jax.random.normal(k1, (c_in, feat_dim), jnp.float32),
        "b_feat": 0.1 * jax.random.normal(k2, (feat_dim,), jnp.float32),
        "w_pose": 5.0 * jax.random.normal(k3, (feat_dim, 3 * n_joints), jnp.float32),
        "w_hm": jax.random.normal(k4, (c_in, n_joints), jnp.float32),
    }


# ----------------------------------------------------------------------------
# Pure-JAX reference of the same GCN stack (f32, unfused, unfolded BN) for correctness check
# ----------------------------------------------------------------------------
def _sem_gconv_ref(x, p, norm_relu, residual=None):
    hi = jax.lax.Precision.HIGHEST
    adj = p["adj"]
    eye = jnp.eye(adj.shape[0], dtype=adj.dtype)
    h0 = jnp.einsum("bjc,cd->bjd", x, p["w0"], precision=hi)
    h1 = jnp.einsum("bjc,cd->bjd", x, p["w1"], precision=hi)
    y = (jnp.einsum("ij,bjd->bid", adj * eye, h0, precision=hi)
         + jnp.einsum("ij,bjd->bid", adj * (1.0 - eye), h1, precision=hi)
         + p["bias"][None, None, :])
    if norm_relu:
        y = jnp.maximum(y * p["scale"][None, None, :] + p["shift"][None, None, :], 0.0)
    if residual is not None:
        y = y + residual
    return y


def gcn_forward_ref(x, params):
    x = _sem_gconv_ref(x, params["input"], True)
    for p1, p2 in params["res_blocks"]:
        y = _sem_gconv_ref(x, p1, True)
        x = _sem_gconv_ref(y, p2, True, residual=x)
    return _sem_gconv_ref(x, params["output"], False)


# ----------------------------------------------------------------------------
# PoseGCN.forward / PoseGCN.inference
# ----------------------------------------------------------------------------
def synthetic_pose_generator(volumes, grid_centers, gp):
    # TODO(synk): pose_generator is an external 3D CNN passed into PoseGCN.__init__;
    # replaced here with a tiny deterministic synthetic stub (plain-JAX glue).
    B = volumes.shape[0]
    pooled = volumes.mean(axis=(2, 3, 4))                                  # (B, C)
    feat = jnp.tanh(pooled @ gp["w_feat"] + gp["b_feat"])                  # (B, F)
    offsets = (feat @ gp["w_pose"]).reshape(B, 3, -1)                      # (B, 3, J)
    com3d = jnp.mean(grid_centers, axis=1)[..., None]                      # (B, 3, 1)
    init_poses = com3d + offsets                                           # (B, 3, J)
    heatmaps = jnp.einsum("bchwd,cj->bjhwd", volumes, gp["w_hm"])          # (B, J, H, W, D)
    return init_poses, heatmaps, None


def posegcn_inference(init_poses, grid_centers, gcn_params, fused_params=None, use_ref=False):
    # TODO(synk): max_coord_3d(heatmaps) + F.grid_sample feature fusion is only used
    # when use_features=True (non-default); skipped here (use_features=False).
    # use_relpose=True:
    com3d = jnp.mean(grid_centers, axis=1)[..., None]                      # (B, 3, 1)
    nvox = round(grid_centers.shape[1] ** (1.0 / 3.0))
    vsize = (jnp.max(grid_centers[0, :, 0]) - jnp.min(grid_centers[0, :, 0])) / nvox
    x0 = (init_poses - com3d) / vsize                                      # (B, 3, J)

    B, _, J = init_poses.shape
    x = jnp.transpose(x0, (0, 2, 1)).reshape(B, -1, 3)                     # (B, J, 3)
    # n_instances=1, social=False, t_dim=1 => the remaining reshapes are identity.

    if use_ref:
        y = gcn_forward_ref(x, gcn_params)                                 # (B, J, 3)
    else:
        y = fused_gcn(x.reshape(B * J, 3), fused_params).reshape(B, J, 3)

    return jnp.transpose(y, (0, 2, 1))                                     # (B, 3, J)


def posegcn_forward(volumes, grid_centers, gen_params, gcn_params,
                    fused_params=None, use_ref=False):
    init_poses, heatmaps, _ = synthetic_pose_generator(volumes, grid_centers, gen_params)
    final_poses = posegcn_inference(init_poses, grid_centers, gcn_params,
                                    fused_params=fused_params, use_ref=use_ref)
    final_poses = final_poses + init_poses   # use_residual=True
    return init_poses, final_poses, heatmaps


# ----------------------------------------------------------------------------
if __name__ == "__main__":
    key = jax.random.PRNGKey(0)
    B, C, H, W, D = 2, 4, 8, 8, 8          # small synthetic volumes (NCDHW-like)
    nvox = 8                               # grid_centers: (B, nvox**3, 3)
    n_joints, hid_dim, n_layers = 8, 32, 3 # small GCN sizes (prod: J=23->pad 24, hid=128)

    k_vol, k_gc, k_params, k_gen = jax.random.split(key, 4)
    volumes = jax.random.normal(k_vol, (B, C, H, W, D), jnp.float32)

    lin = jnp.linspace(-52.5, 52.5, nvox)
    gx, gy, gz = jnp.meshgrid(lin, lin, lin, indexing="ij")
    grid = jnp.stack([gx.ravel(), gy.ravel(), gz.ravel()], axis=-1)        # (512, 3)
    grid_centers = grid[None] + 10.0 * jax.random.normal(k_gc, (B, 1, 3), jnp.float32)

    gcn_params = build_posegcn_params(k_params, n_joints, hid_dim, n_layers)
    gen_params = build_pose_generator_params(k_gen, C, n_joints)
    # Fold BN into W/b, cast MXU operands to bf16, split adjacency into diag/off-diag.
    fused_params = prepare_fused_gcn_params(gcn_params)

    init_poses, final_poses, heatmaps = posegcn_forward(
        volumes, grid_centers, gen_params, gcn_params, fused_params=fused_params)
    final_poses = jax.block_until_ready(final_poses)

    # Correctness check against a pure-JAX f32 reference of the same math (unfused,
    # unfolded BN).  final_poses = init_poses + gcn(x) and init_poses dominates in
    # magnitude, so the tolerance is normalized to the GCN-output scale; the remaining
    # slack accounts for bf16 MXU operands (per perf review) across the 8-gconv stack.
    _, final_ref, _ = posegcn_forward(
        volumes, grid_centers, gen_params, gcn_params, use_ref=True)
    final_ref = jax.block_until_ready(final_ref)

    init_np = np.asarray(init_poses)
    final_np = np.asarray(final_poses)
    ref_np = np.asarray(final_ref)

    assert init_poses.shape == (B, 3, n_joints)
    assert final_poses.shape == (B, 3, n_joints)
    assert heatmaps.shape == (B, n_joints, H, W, D)
    assert bool(np.all(np.isfinite(final_np)))

    gcn_scale = float(np.max(np.abs(ref_np - init_np))) + 1e-6
    np.testing.assert_allclose(final_np, ref_np,
                               rtol=5e-2, atol=5e-2 * gcn_scale + 1e-3)

    print("KERNEL_OK")
</pallas_src>

<mosaic_0001>
module attributes {stable_mosaic.version = 11 : i64} {
  func.func @_fused_gcn_kernel(%arg0: i32, %arg1: memref<16x3xf32, #tpu.memory_space<vmem>>, %arg2: memref<3x32xbf16, #tpu.memory_space<vmem>>, %arg3: memref<3x32xbf16, #tpu.memory_space<vmem>>, %arg4: memref<1x32xf32, #tpu.memory_space<vmem>>, %arg5: memref<8x8xbf16, #tpu.memory_space<vmem>>, %arg6: memref<8x1xf32, #tpu.memory_space<vmem>>, %arg7: memref<6x32x32xbf16, #tpu.memory_space<vmem>>, %arg8: memref<6x32x32xbf16, #tpu.memory_space<vmem>>, %arg9: memref<6x1x32xf32, #tpu.memory_space<vmem>>, %arg10: memref<6x8x8xbf16, #tpu.memory_space<vmem>>, %arg11: memref<6x8x1xf32, #tpu.memory_space<vmem>>, %arg12: memref<32x3xbf16, #tpu.memory_space<vmem>>, %arg13: memref<32x3xbf16, #tpu.memory_space<vmem>>, %arg14: memref<1x3xf32, #tpu.memory_space<vmem>>, %arg15: memref<8x8xbf16, #tpu.memory_space<vmem>>, %arg16: memref<8x1xf32, #tpu.memory_space<vmem>>, %arg17: memref<16x3xf32, #tpu.memory_space<vmem>>) attributes {dimension_semantics = [#tpu.dimension_semantics<parallel>], iteration_bounds = array<i64: 1>, scalar_prefetch = 0 : i64, scratch_operands = 0 : i64, tpu.core_type = #tpu.core_type<tc>, window_params = [{transform_indices = @transform_0, window_bounds = array<i64: 16, 3>}, {pipeline_mode = #tpu.pipeline_mode<synchronous>, transform_indices = @transform_1, window_bounds = array<i64: 3, 32>}, {pipeline_mode = #tpu.pipeline_mode<synchronous>, transform_indices = @transform_2, window_bounds = array<i64: 3, 32>}, {pipeline_mode = #tpu.pipeline_mode<synchronous>, transform_indices = @transform_3, window_bounds = array<i64: 1, 32>}, {pipeline_mode = #tpu.pipeline_mode<synchronous>, transform_indices = @transform_4, window_bounds = array<i64: 8, 8>}, {pipeline_mode = #tpu.pipeline_mode<synchronous>, transform_indices = @transform_5, window_bounds = array<i64: 8, 1>}, {pipeline_mode = #tpu.pipeline_mode<synchronous>, transform_indices = @transform_6, window_bounds = array<i64: 6, 32, 32>}, {pipeline_mode = #tpu.pipeline_mode<synchronous>, transform_indices = @transform_7, window_bounds = array<i64: 6, 32, 32>}, {pipeline_mode = #tpu.pipeline_mode<synchronous>, transform_indices = @transform_8, window_bounds = array<i64: 6, 1, 32>}, {pipeline_mode = #tpu.pipeline_mode<synchronous>, transform_indices = @transform_9, window_bounds = array<i64: 6, 8, 8>}, {pipeline_mode = #tpu.pipeline_mode<synchronous>, transform_indices = @transform_10, window_bounds = array<i64: 6, 8, 1>}, {pipeline_mode = #tpu.pipeline_mode<synchronous>, transform_indices = @transform_11, window_bounds = array<i64: 32, 3>}, {pipeline_mode = #tpu.pipeline_mode<synchronous>, transform_indices = @transform_12, window_bounds = array<i64: 32, 3>}, {pipeline_mode = #tpu.pipeline_mode<synchronous>, transform_indices = @transform_13, window_bounds = array<i64: 1, 3>}, {pipeline_mode = #tpu.pipeline_mode<synchronous>, transform_indices = @transform_14, window_bounds = array<i64: 8, 8>}, {pipeline_mode = #tpu.pipeline_mode<synchronous>, transform_indices = @transform_15, window_bounds = array<i64: 8, 1>}, {transform_indices = @transform_16, window_bounds = array<i64: 16, 3>}]} {
    %c0 = arith.constant 0 : index
    %c0_0 = arith.constant 0 : index
    %0 = vector.load %arg1[%c0, %c0_0] : memref<16x3xf32, #tpu.memory_space<vmem>>, vector<16x3xf32>
    %c0_1 = arith.constant 0 : index
    %c0_2 = arith.constant 0 : index
    %1 = vector.load %arg2[%c0_1, %c0_2] : memref<3x32xbf16, #tpu.memory_space<vmem>>, vector<3x32xbf16>
    %c0_3 = arith.constant 0 : index
    %c0_4 = arith.constant 0 : index
    %2 = vector.load %arg3[%c0_3, %c0_4] : memref<3x32xbf16, #tpu.memory_space<vmem>>, vector<3x32xbf16>
    %c0_5 = arith.constant 0 : index
    %c0_6 = arith.constant 0 : index
    %3 = vector.load %arg4[%c0_5, %c0_6] : memref<1x32xf32, #tpu.memory_space<vmem>>, vector<1x32xf32>
    %c0_7 = arith.constant 0 : index
    %c0_8 = arith.constant 0 : index
    %4 = vector.load %arg5[%c0_7, %c0_8] : memref<8x8xbf16, #tpu.memory_space<vmem>>, vector<8x8xbf16>
    %c0_9 = arith.constant 0 : index
    %c0_10 = arith.constant 0 : index
    %5 = vector.load %arg6[%c0_9, %c0_10] : memref<8x1xf32, #tpu.memory_space<vmem>>, vector<8x1xf32>
    %6 = arith.truncf %0 : vector<16x3xf32> to vector<16x3xbf16>
    %cst = arith.constant dense<0.000000e+00> : vector<16x32xf32>
    %7 = tpu.matmul %6, %1, %cst {dimension_numbers = #tpu.dot_dimension_numbers<[1], [0], [0], [1], [0, 0, 1, 1], [], []>} : vector<16x3xbf16>, vector<3x32xbf16>, vector<16x32xf32> -> vector<16x32xf32>
    %cst_11 = arith.constant dense<0.000000e+00> : vector<16x32xf32>
    %8 = tpu.matmul %6, %2, %cst_11 {dimension_numbers = #tpu.dot_dimension_numbers<[1], [0], [0], [1], [0, 0, 1, 1], [], []>} : vector<16x3xbf16>, vector<3x32xbf16>, vector<16x32xf32> -> vector<16x32xf32>
    %9 = vector.shape_cast %7 : vector<16x32xf32> to vector<2x8x32xf32>
    %10 = vector.shape_cast %8 : vector<16x32xf32> to vector<2x8x32xf32>
    %11 = vector.shape_cast %4 : vector<8x8xbf16> to vector<1x8x8xbf16>
    %12 = vector.broadcast %11 : vector<1x8x8xbf16> to vector<2x8x8xbf16>
    %13 = arith.truncf %10 : vector<2x8x32xf32> to vector<2x8x32xbf16>
    "tpu.trace_start"() <{level = 10 : i32, message = "bij,bjd->bid"}> : () -> ()
    %cst_12 = arith.constant dense<0.000000e+00> : vector<2x8x32xf32>
    %14 = tpu.matmul %12, %13, %cst_12 {dimension_numbers = #tpu.dot_dimension_numbers<[2], [1], [1], [2], [0, 0, 0, 1, 1, 2], [0], [0]>} : vector<2x8x8xbf16>, vector<2x8x32xbf16>, vector<2x8x32xf32> -> vector<2x8x32xf32>
    "tpu.trace_stop"() : () -> ()
    %15 = vector.shape_cast %5 : vector<8x1xf32> to vector<1x8x1xf32>
    %16 = vector.broadcast %15 : vector<1x8x1xf32> to vector<2x8x32xf32>
    %17 = arith.mulf %16, %9 : vector<2x8x32xf32>
    %18 = arith.addf %17, %14 : vector<2x8x32xf32>
    %19 = vector.shape_cast %3 : vector<1x32xf32> to vector<1x1x32xf32>
    %20 = vector.broadcast %19 : vector<1x1x32xf32> to vector<2x8x32xf32>
    %21 = arith.addf %18, %20 : vector<2x8x32xf32>
    %cst_13 = arith.constant 0.000000e+00 : f32
    %22 = vector.broadcast %cst_13 : f32 to vector<2x8x32xf32>
    %23 = arith.maximumf %21, %22 : vector<2x8x32xf32>
    %24 = vector.shape_cast %23 : vector<2x8x32xf32> to vector<16x32xf32>
    %c0_14 = arith.constant 0 : index
    %c0_15 = arith.constant 0 : index
    %c0_16 = arith.constant 0 : index
    %25 = vector.load %arg7[%c0_14, %c0_15, %c0_16] : memref<6x32x32xbf16, #tpu.memory_space<vmem>>, vector<1x32x32xbf16>
    %26 = vector.shape_cast %25 : vector<1x32x32xbf16> to vector<32x32xbf16>
    %c0_17 = arith.constant 0 : index
    %c0_18 = arith.constant 0 : index
    %c0_19 = arith.constant 0 : index
    %27 = vector.load %arg8[%c0_17, %c0_18, %c0_19] : memref<6x32x32xbf16, #tpu.memory_space<vmem>>, vector<1x32x32xbf16>
    %28 = vector.shape_cast %27 : vector<1x32x32xbf16> to vector<32x32xbf16>
    %c0_20 = arith.constant 0 : index
    %c0_21 = arith.constant 0 : index
    %c0_22 = arith.constant 0 : index
    %29 = vector.load %arg9[%c0_20, %c0_21, %c0_22] : memref<6x1x32xf32, #tpu.memory_space<vmem>>, vector<1x1x32xf32>
    %30 = vector.shape_cast %29 : vector<1x1x32xf32> to vector<1x32xf32>
    %c0_23 = arith.constant 0 : index
    %c0_24 = arith.constant 0 : index
    %c0_25 = arith.constant 0 : index
    %31 = vector.load %arg10[%c0_23, %c0_24, %c0_25] : memref<6x8x8xbf16, #tpu.memory_space<vmem>>, vector<1x8x8xbf16>
    %32 = vector.shape_cast %31 : vector<1x8x8xbf16> to vector<8x8xbf16>
    %c0_26 = arith.constant 0 : index
    %c0_27 = arith.constant 0 : index
    %c0_28 = arith.constant 0 : index
    %33 = vector.load %arg11[%c0_26, %c0_27, %c0_28] : memref<6x8x1xf32, #tpu.memory_space<vmem>>, vector<1x8x1xf32>
    %34 = vector.shape_cast %33 : vector<1x8x1xf32> to vector<8x1xf32>
    %35 = arith.truncf %24 : vector<16x32xf32> to vector<16x32xbf16>
    %cst_29 = arith.constant dense<0.000000e+00> : vector<16x32xf32>
    %36 = tpu.matmul %35, %26, %cst_29 {dimension_numbers = #tpu.dot_dimension_numbers<[1], [0], [0], [1], [0, 0, 1, 1], [], []>} : vector<16x32xbf16>, vector<32x32xbf16>, vector<16x32xf32> -> vector<16x32xf32>
    %cst_30 = arith.constant dense<0.000000e+00> : vector<16x32xf32>
    %37 = tpu.matmul %35, %28, %cst_30 {dimension_numbers = #tpu.dot_dimension_numbers<[1], [0], [0], [1], [0, 0, 1, 1], [], []>} : vector<16x32xbf16>, vector<32x32xbf16>, vector<16x32xf32> -> vector<16x32xf32>
    %38 = vector.shape_cast %36 : vector<16x32xf32> to vector<2x8x32xf32>
    %39 = vector.shape_cast %37 : vector<16x32xf32> to vector<2x8x32xf32>
    %40 = vector.shape_cast %32 : vector<8x8xbf16> to vector<1x8x8xbf16>
    %41 = vector.broadcast %40 : vector<1x8x8xbf16> to vector<2x8x8xbf16>
    %42 = arith.truncf %39 : vector<2x8x32xf32> to vector<2x8x32xbf16>
    "tpu.trace_start"() <{level = 10 : i32, message = "bij,bjd->bid"}> : () -> ()
    %cst_31 = arith.constant dense<0.000000e+00> : vector<2x8x32xf32>
    %43 = tpu.matmul %41, %42, %cst_31 {dimension_numbers = #tpu.dot_dimension_numbers<[2], [1], [1], [2], [0, 0, 0, 1, 1, 2], [0], [0]>} : vector<2x8x8xbf16>, vector<2x8x32xbf16>, vector<2x8x32xf32> -> vector<2x8x32xf32>
    "tpu.trace_stop"() : () -> ()
    %44 = vector.shape_cast %34 : vector<8x1xf32> to vector<1x8x1xf32>
    %45 = vector.broadcast %44 : vector<1x8x1xf32> to vector<2x8x32xf32>
    %46 = arith.mulf %45, %38 : vector<2x8x32xf32>
    %47 = arith.addf %46, %43 : vector<2x8x32xf32>
    %48 = vector.shape_cast %30 : vector<1x32xf32> to vector<1x1x32xf32>
    %49 = vector.broadcast %48 : vector<1x1x32xf32> to vector<2x8x32xf32>
    %50 = arith.addf %47, %49 : vector<2x8x32xf32>
    %cst_32 = arith.constant 0.000000e+00 : f32
    %51 = vector.broadcast %cst_32 : f32 to vector<2x8x32xf32>
    %52 = arith.maximumf %50, %51 : vector<2x8x32xf32>
    %53 = vector.shape_cast %52 : vector<2x8x32xf32> to vector<16x32xf32>
    %c1 = arith.constant 1 : index
    %c0_33 = arith.constant 0 : index
    %c0_34 = arith.constant 0 : index
    %54 = vector.load %arg7[%c1, %c0_33, %c0_34] : memref<6x32x32xbf16, #tpu.memory_space<vmem>>, vector<1x32x32xbf16>
    %55 = vector.shape_cast %54 : vector<1x32x32xbf16> to vector<32x32xbf16>
    %c1_35 = arith.constant 1 : index
    %c0_36 = arith.constant 0 : index
    %c0_37 = arith.constant 0 : index
    %56 = vector.load %arg8[%c1_35, %c0_36, %c0_37] : memref<6x32x32xbf16, #tpu.memory_space<vmem>>, vector<1x32x32xbf16>
    %57 = vector.shape_cast %56 : vector<1x32x32xbf16> to vector<32x32xbf16>
    %c1_38 = arith.constant 1 : index
    %c0_39 = arith.constant 0 : index
    %c0_40 = arith.constant 0 : index
    %58 = vector.load %arg9[%c1_38, %c0_39, %c0_40] : memref<6x1x32xf32, #tpu.memory_space<vmem>>, vector<1x1x32xf32>
    %59 = vector.shape_cast %58 : vector<1x1x32xf32> to vector<1x32xf32>
    %c1_41 = arith.constant 1 : index
    %c0_42 = arith.constant 0 : index
    %c0_43 = arith.constant 0 : index
    %60 = vector.load %arg10[%c1_41, %c0_42, %c0_43] : memref<6x8x8xbf16, #tpu.memory_space<vmem>>, vector<1x8x8xbf16>
    %61 = vector.shape_cast %60 : vector<1x8x8xbf16> to vector<8x8xbf16>
    %c1_44 = arith.constant 1 : index
    %c0_45 = arith.constant 0 : index
    %c0_46 = arith.constant 0 : index
    %62 = vector.load %arg11[%c1_44, %c0_45, %c0_46] : memref<6x8x1xf32, #tpu.memory_space<vmem>>, vector<1x8x1xf32>
    %63 = vector.shape_cast %62 : vector<1x8x1xf32> to vector<8x1xf32>
    %64 = arith.truncf %53 : vector<16x32xf32> to vector<16x32xbf16>
    %cst_47 = arith.constant dense<0.000000e+00> : vector<16x32xf32>
    %65 = tpu.matmul %64, %55, %cst_47 {dimension_numbers = #tpu.dot_dimension_numbers<[1], [0], [0], [1], [0, 0, 1, 1], [], []>} : vector<16x32xbf16>, vector<32x32xbf16>, vector<16x32xf32> -> vector<16x32xf32>
    %cst_48 = arith.constant dense<0.000000e+00> : vector<16x32xf32>
    %66 = tpu.matmul %64, %57, %cst_48 {dimension_numbers = #tpu.dot_dimension_numbers<[1], [0], [0], [1], [0, 0, 1, 1], [], []>} : vector<16x32xbf16>, vector<32x32xbf16>, vector<16x32xf32> -> vector<16x32xf32>
    %67 = vector.shape_cast %65 : vector<16x32xf32> to vector<2x8x32xf32>
    %68 = vector.shape_cast %66 : vector<16x32xf32> to vector<2x8x32xf32>
    %69 = vector.shape_cast %61 : vector<8x8xbf16> to vector<1x8x8xbf16>
    %70 = vector.broadcast %69 : vector<1x8x8xbf16> to vector<2x8x8xbf16>
    %71 = arith.truncf %68 : vector<2x8x32xf32> to vector<2x8x32xbf16>
    "tpu.trace_start"() <{level = 10 : i32, message = "bij,bjd->bid"}> : () -> ()
    %cst_49 = arith.constant dense<0.000000e+00> : vector<2x8x32xf32>
    %72 = tpu.matmul %70, %71, %cst_49 {dimension_numbers = #tpu.dot_dimension_numbers<[2], [1], [1], [2], [0, 0, 0, 1, 1, 2], [0], [0]>} : vector<2x8x8xbf16>, vector<2x8x32xbf16>, vector<2x8x32xf32> -> vector<2x8x32xf32>
    "tpu.trace_stop"() : () -> ()
    %73 = vector.shape_cast %63 : vector<8x1xf32> to vector<1x8x1xf32>
    %74 = vector.broadcast %73 : vector<1x8x1xf32> to vector<2x8x32xf32>
    %75 = arith.mulf %74, %67 : vector<2x8x32xf32>
    %76 = arith.addf %75, %72 : vector<2x8x32xf32>
    %77 = vector.shape_cast %59 : vector<1x32xf32> to vector<1x1x32xf32>
    %78 = vector.broadcast %77 : vector<1x1x32xf32> to vector<2x8x32xf32>
    %79 = arith.addf %76, %78 : vector<2x8x32xf32>
    %cst_50 = arith.constant 0.000000e+00 : f32
    %80 = vector.broadcast %cst_50 : f32 to vector<2x8x32xf32>
    %81 = arith.maximumf %79, %80 : vector<2x8x32xf32>
    %82 = vector.shape_cast %81 : vector<2x8x32xf32> to vector<16x32xf32>
    %83 = arith.addf %82, %24 : vector<16x32xf32>
    %c2 = arith.constant 2 : index
    %c0_51 = arith.constant 0 : index
    %c0_52 = arith.constant 0 : index
    %84 = vector.load %arg7[%c2, %c0_51, %c0_52] : memref<6x32x32xbf16, #tpu.memory_space<vmem>>, vector<1x32x32xbf16>
    %85 = vector.shape_cast %84 : vector<1x32x32xbf16> to vector<32x32xbf16>
    %c2_53 = arith.constant 2 : index
    %c0_54 = arith.constant 0 : index
    %c0_55 = arith.constant 0 : index
    %86 = vector.load %arg8[%c2_53, %c0_54, %c0_55] : memref<6x32x32xbf16, #tpu.memory_space<vmem>>, vector<1x32x32xbf16>
    %87 = vector.shape_cast %86 : vector<1x32x32xbf16> to vector<32x32xbf16>
    %c2_56 = arith.constant 2 : index
    %c0_57 = arith.constant 0 : index
    %c0_58 = arith.constant 0 : index
    %88 = vector.load %arg9[%c2_56, %c0_57, %c0_58] : memref<6x1x32xf32, #tpu.memory_space<vmem>>, vector<1x1x32xf32>
    %89 = vector.shape_cast %88 : vector<1x1x32xf32> to vector<1x32xf32>
    %c2_59 = arith.constant 2 : index
    %c0_60 = arith.constant 0 : index
    %c0_61 = arith.constant 0 : index
    %90 = vector.load %arg10[%c2_59, %c0_60, %c0_61] : memref<6x8x8xbf16, #tpu.memory_space<vmem>>, vector<1x8x8xbf16>
    %91 = vector.shape_cast %90 : vector<1x8x8xbf16> to vector<8x8xbf16>
    %c2_62 = arith.constant 2 : index
    %c0_63 = arith.constant 0 : index
    %c0_64 = arith.constant 0 : index
    %92 = vector.load %arg11[%c2_62, %c0_63, %c0_64] : memref<6x8x1xf32, #tpu.memory_space<vmem>>, vector<1x8x1xf32>
    %93 = vector.shape_cast %92 : vector<1x8x1xf32> to vector<8x1xf32>
    %94 = arith.truncf %83 : vector<16x32xf32> to vector<16x32xbf16>
    %cst_65 = arith.constant dense<0.000000e+00> : vector<16x32xf32>
    %95 = tpu.matmul %94, %85, %cst_65 {dimension_numbers = #tpu.dot_dimension_numbers<[1], [0], [0], [1], [0, 0, 1, 1], [], []>} : vector<16x32xbf16>, vector<32x32xbf16>, vector<16x32xf32> -> vector<16x32xf32>
    %cst_66 = arith.constant dense<0.000000e+00> : vector<16x32xf32>
    %96 = tpu.matmul %94, %87, %cst_66 {dimension_numbers = #tpu.dot_dimension_numbers<[1], [0], [0], [1], [0, 0, 1, 1], [], []>} : vector<16x32xbf16>, vector<32x32xbf16>, vector<16x32xf32> -> vector<16x32xf32>
    %97 = vector.shape_cast %95 : vector<16x32xf32> to vector<2x8x32xf32>
    %98 = vector.shape_cast %96 : vector<16x32xf32> to vector<2x8x32xf32>
    %99 = vector.shape_cast %91 : vector<8x8xbf16> to vector<1x8x8xbf16>
    %100 = vector.broadcast %99 : vector<1x8x8xbf16> to vector<2x8x8xbf16>
    %101 = arith.truncf %98 : vector<2x8x32xf32> to vector<2x8x32xbf16>
    "tpu.trace_start"() <{level = 10 : i32, message = "bij,bjd->bid"}> : () -> ()
    %cst_67 = arith.constant dense<0.000000e+00> : vector<2x8x32xf32>
    %102 = tpu.matmul %100, %101, %cst_67 {dimension_numbers = #tpu.dot_dimension_numbers<[2], [1], [1], [2], [0, 0, 0, 1, 1, 2], [0], [0]>} : vector<2x8x8xbf16>, vector<2x8x32xbf16>, vector<2x8x32xf32> -> vector<2x8x32xf32>
    "tpu.trace_stop"() : () -> ()
    %103 = vector.shape_cast %93 : vector<8x1xf32> to vector<1x8x1xf32>
    %104 = vector.broadcast %103 : vector<1x8x1xf32> to vector<2x8x32xf32>
    %105 = arith.mulf %104, %97 : vector<2x8x32xf32>
    %106 = arith.addf %105, %102 : vector<2x8x32xf32>
    %107 = vector.shape_cast %89 : vector<1x32xf32> to vector<1x1x32xf32>
    %108 = vector.broadcast %107 : vector<1x1x32xf32> to vector<2x8x32xf32>
    %109 = arith.addf %106, %108 : vector<2x8x32xf32>
    %cst_68 = arith.constant 0.000000e+00 : f32
    %110 = vector.broadcast %cst_68 : f32 to vector<2x8x32xf32>
    %111 = arith.maximumf %109, %110 : vector<2x8x32xf32>
    %112 = vector.shape_cast %111 : vector<2x8x32xf32> to vector<16x32xf32>
    %c3 = arith.constant 3 : index
    %c0_69 = arith.constant 0 : index
    %c0_70 = arith.constant 0 : index
    %113 = vector.load %arg7[%c3, %c0_69, %c0_70] : memref<6x32x32xbf16, #tpu.memory_space<vmem>>, vector<1x32x32xbf16>
    %114 = vector.shape_cast %113 : vector<1x32x32xbf16> to vector<32x32xbf16>
    %c3_71 = arith.constant 3 : index
    %c0_72 = arith.constant 0 : index
    %c0_73 = arith.constant 0 : index
    %115 = vector.load %arg8[%c3_71, %c0_72, %c0_73] : memref<6x32x32xbf16, #tpu.memory_space<vmem>>, vector<1x32x32xbf16>
    %116 = vector.shape_cast %115 : vector<1x32x32xbf16> to vector<32x32xbf16>
    %c3_74 = arith.constant 3 : index
    %c0_75 = arith.constant 0 : index
    %c0_76 = arith.constant 0 : index
    %117 = vector.load %arg9[%c3_74, %c0_75, %c0_76] : memref<6x1x32xf32, #tpu.memory_space<vmem>>, vector<1x1x32xf32>
    %118 = vector.shape_cast %117 : vector<1x1x32xf32> to vector<1x32xf32>
    %c3_77 = arith.constant 3 : index
    %c0_78 = arith.constant 0 : index
    %c0_79 = arith.constant 0 : index
    %119 = vector.load %arg10[%c3_77, %c0_78, %c0_79] : memref<6x8x8xbf16, #tpu.memory_space<vmem>>, vector<1x8x8xbf16>
    %120 = vector.shape_cast %119 : vector<1x8x8xbf16> to vector<8x8xbf16>
    %c3_80 = arith.constant 3 : index
    %c0_81 = arith.constant 0 : index
    %c0_82 = arith.constant 0 : index
    %121 = vector.load %arg11[%c3_80, %c0_81, %c0_82] : memref<6x8x1xf32, #tpu.memory_space<vmem>>, vector<1x8x1xf32>
    %122 = vector.shape_cast %121 : vector<1x8x1xf32> to vector<8x1xf32>
    %123 = arith.truncf %112 : vector<16x32xf32> to vector<16x32xbf16>
    %cst_83 = arith.constant dense<0.000000e+00> : vector<16x32xf32>
    %124 = tpu.matmul %123, %114, %cst_83 {dimension_numbers = #tpu.dot_dimension_numbers<[1], [0], [0], [1], [0, 0, 1, 1], [], []>} : vector<16x32xbf16>, vector<32x32xbf16>, vector<16x32xf32> -> vector<16x32xf32>
    %cst_84 = arith.constant dense<0.000000e+00> : vector<16x32xf32>
    %125 = tpu.matmul %123, %116, %cst_84 {dimension_numbers = #tpu.dot_dimension_numbers<[1], [0], [0], [1], [0, 0, 1, 1], [], []>} : vector<16x32xbf16>, vector<32x32xbf16>, vector<16x32xf32> -> vector<16x32xf32>
    %126 = vector.shape_cast %124 : vector<16x32xf32> to vector<2x8x32xf32>
    %127 = vector.shape_cast %125 : vector<16x32xf32> to vector<2x8x32xf32>
    %128 = vector.shape_cast %120 : vector<8x8xbf16> to vector<1x8x8xbf16>
    %129 = vector.broadcast %128 : vector<1x8x8xbf16> to vector<2x8x8xbf16>
    %130 = arith.truncf %127 : vector<2x8x32xf32> to vector<2x8x32xbf16>
    "tpu.trace_start"() <{level = 10 : i32, message = "bij,bjd->bid"}> : () -> ()
    %cst_85 = arith.constant dense<0.000000e+00> : vector<2x8x32xf32>
    %131 = tpu.matmul %129, %130, %cst_85 {dimension_numbers = #tpu.dot_dimension_numbers<[2], [1], [1], [2], [0, 0, 0, 1, 1, 2], [0], [0]>} : vector<2x8x8xbf16>, vector<2x8x32xbf16>, vector<2x8x32xf32> -> vector<2x8x32xf32>
    "tpu.trace_stop"() : () -> ()
    %132 = vector.shape_cast %122 : vector<8x1xf32> to vector<1x8x1xf32>
    %133 = vector.broadcast %132 : vector<1x8x1xf32> to vector<2x8x32xf32>
    %134 = arith.mulf %133, %126 : vector<2x8x32xf32>
    %135 = arith.addf %134, %131 : vector<2x8x32xf32>
    %136 = vector.shape_cast %118 : vector<1x32xf32> to vector<1x1x32xf32>
    %137 = vector.broadcast %136 : vector<1x1x32xf32> to vector<2x8x32xf32>
    %138 = arith.addf %135, %137 : vector<2x8x32xf32>
    %cst_86 = arith.constant 0.000000e+00 : f32
    %139 = vector.broadcast %cst_86 : f32 to vector<2x8x32xf32>
    %140 = arith.maximumf %138, %139 : vector<2x8x32xf32>
    %141 = vector.shape_cast %140 : vector<2x8x32xf32> to vector<16x32xf32>
    %142 = arith.addf %141, %83 : vector<16x32xf32>
    %c4 = arith.constant 4 : index
    %c0_87 = arith.constant 0 : index
    %c0_88 = arith.constant 0 : index
    %143 = vector.load %arg7[%c4, %c0_87, %c0_88] : memref<6x32x32xbf16, #tpu.memory_space<vmem>>, vector<1x32x32xbf16>
    %144 = vector.shape_cast %143 : vector<1x32x32xbf16> to vector<32x32xbf16>
    %c4_89 = arith.constant 4 : index
    %c0_90 = arith.constant 0 : index
    %c0_91 = arith.constant 0 : index
    %145 = vector.load %arg8[%c4_89, %c0_90, %c0_91] : memref<6x32x32xbf16, #tpu.memory_space<vmem>>, vector<1x32x32xbf16>
    %146 = vector.shape_cast %145 : vector<1x32x32xbf16> to vector<32x32xbf16>
    %c4_92 = arith.constant 4 : index
    %c0_93 = arith.constant 0 : index
    %c0_94 = arith.constant 0 : index
    %147 = vector.load %arg9[%c4_92, %c0_93, %c0_94] : memref<6x1x32xf32, #tpu.memory_space<vmem>>, vector<1x1x32xf32>
    %148 = vector.shape_cast %147 : vector<1x1x32xf32> to vector<1x32xf32>
    %c4_95 = arith.constant 4 : index
    %c0_96 = arith.constant 0 : index
    %c0_97 = arith.constant 0 : index
    %149 = vector.load %arg10[%c4_95, %c0_96, %c0_97] : memref<6x8x8xbf16, #tpu.memory_space<vmem>>, vector<1x8x8xbf16>
    %150 = vector.shape_cast %149 : vector<1x8x8xbf16> to vector<8x8xbf16>
    %c4_98 = arith.constant 4 : index
    %c0_99 = arith.constant 0 : index
    %c0_100 = arith.constant 0 : index
    %151 = vector.load %arg11[%c4_98, %c0_99, %c0_100] : memref<6x8x1xf32, #tpu.memory_space<vmem>>, vector<1x8x1xf32>
    %152 = vector.shape_cast %151 : vector<1x8x1xf32> to vector<8x1xf32>
    %153 = arith.truncf %142 : vector<16x32xf32> to vector<16x32xbf16>
    %cst_101 = arith.constant dense<0.000000e+00> : vector<16x32xf32>
    %154 = tpu.matmul %153, %144, %cst_101 {dimension_numbers = #tpu.dot_dimension_numbers<[1], [0], [0], [1], [0, 0, 1, 1], [], []>} : vector<16x32xbf16>, vector<32x32xbf16>, vector<16x32xf32> -> vector<16x32xf32>
    %cst_102 = arith.constant dense<0.000000e+00> : vector<16x32xf32>
    %155 = tpu.matmul %153, %146, %cst_102 {dimension_numbers = #tpu.dot_dimension_numbers<[1], [0], [0], [1], [0, 0, 1, 1], [], []>} : vector<16x32xbf16>, vector<32x32xbf16>, vector<16x32xf32> -> vector<16x32xf32>
    %156 = vector.shape_cast %154 : vector<16x32xf32> to vector<2x8x32xf32>
    %157 = vector.shape_cast %155 : vector<16x32xf32> to vector<2x8x32xf32>
    %158 = vector.shape_cast %150 : vector<8x8xbf16> to vector<1x8x8xbf16>
    %159 = vector.broadcast %158 : vector<1x8x8xbf16> to vector<2x8x8xbf16>
    %160 = arith.truncf %157 : vector<2x8x32xf32> to vector<2x8x32xbf16>
    "tpu.trace_start"() <{level = 10 : i32, message = "bij,bjd->bid"}> : () -> ()
    %cst_103 = arith.constant dense<0.000000e+00> : vector<2x8x32xf32>
    %161 = tpu.matmul %159, %160, %cst_103 {dimension_numbers = #tpu.dot_dimension_numbers<[2], [1], [1], [2], [0, 0, 0, 1, 1, 2], [0], [0]>} : vector<2x8x8xbf16>, vector<2x8x32xbf16>, vector<2x8x32xf32> -> vector<2x8x32xf32>
    "tpu.trace_stop"() : () -> ()
    %162 = vector.shape_cast %152 : vector<8x1xf32> to vector<1x8x1xf32>
    %163 = vector.broadcast %162 : vector<1x8x1xf32> to vector<2x8x32xf32>
    %164 = arith.mulf %163, %156 : vector<2x8x32xf32>
    %165 = arith.addf %164, %161 : vector<2x8x32xf32>
    %166 = vector.shape_cast %148 : vector<1x32xf32> to vector<1x1x32xf32>
    %167 = vector.broadcast %166 : vector<1x1x32xf32> to vector<2x8x32xf32>
    %168 = arith.addf %165, %167 : vector<2x8x32xf32>
    %cst_104 = arith.constant 0.000000e+00 : f32
    %169 = vector.broadcast %cst_104 : f32 to vector<2x8x32xf32>
    %170 = arith.maximumf %168, %169 : vector<2x8x32xf32>
    %171 = vector.shape_cast %170 : vector<2x8x32xf32> to vector<16x32xf32>
    %c5 = arith.constant 5 : index
    %c0_105 = arith.constant 0 : index
    %c0_106 = arith.constant 0 : index
    %172 = vector.load %arg7[%c5, %c0_105, %c0_106] : memref<6x32x32xbf16, #tpu.memory_space<vmem>>, vector<1x32x32xbf16>
    %173 = vector.shape_cast %172 : vector<1x32x32xbf16> to vector<32x32xbf16>
    %c5_107 = arith.constant 5 : index
    %c0_108 = arith.constant 0 : index
    %c0_109 = arith.constant 0 : index
    %174 = vector.load %arg8[%c5_107, %c0_108, %c0_109] : memref<6x32x32xbf16, #tpu.memory_space<vmem>>, vector<1x32x32xbf16>
    %175 = vector.shape_cast %174 : vector<1x32x32xbf16> to vector<32x32xbf16>
    %c5_110 = arith.constant 5 : index
    %c0_111 = arith.constant 0 : index
    %c0_112 = arith.constant 0 : index
    %176 = vector.load %arg9[%c5_110, %c0_111, %c0_112] : memref<6x1x32xf32, #tpu.memory_space<vmem>>, vector<1x1x32xf32>
    %177 = vector.shape_cast %176 : vector<1x1x32xf32> to vector<1x32xf32>
    %c5_113 = arith.constant 5 : index
    %c0_114 = arith.constant 0 : index
    %c0_115 = arith.constant 0 : index
    %178 = vector.load %arg10[%c5_113, %c0_114, %c0_115] : memref<6x8x8xbf16, #tpu.memory_space<vmem>>, vector<1x8x8xbf16>
    %179 = vector.shape_cast %178 : vector<1x8x8xbf16> to vector<8x8xbf16>
    %c5_116 = arith.constant 5 : index
    %c0_117 = arith.constant 0 : index
    %c0_118 = arith.constant 0 : index
    %180 = vector.load %arg11[%c5_116, %c0_117, %c0_118] : memref<6x8x1xf32, #tpu.memory_space<vmem>>, vector<1x8x1xf32>
    %181 = vector.shape_cast %180 : vector<1x8x1xf32> to vector<8x1xf32>
    %182 = arith.truncf %171 : vector<16x32xf32> to vector<16x32xbf16>
    %cst_119 = arith.constant dense<0.000000e+00> : vector<16x32xf32>
    %183 = tpu.matmul %182, %173, %cst_119 {dimension_numbers = #tpu.dot_dimension_numbers<[1], [0], [0], [1], [0, 0, 1, 1], [], []>} : vector<16x32xbf16>, vector<32x32xbf16>, vector<16x32xf32> -> vector<16x32xf32>
    %cst_120 = arith.constant dense<0.000000e+00> : vector<16x32xf32>
    %184 = tpu.matmul %182, %175, %cst_120 {dimension_numbers = #tpu.dot_dimension_numbers<[1], [0], [0], [1], [0, 0, 1, 1], [], []>} : vector<16x32xbf16>, vector<32x32xbf16>, vector<16x32xf32> -> vector<16x32xf32>
    %185 = vector.shape_cast %183 : vector<16x32xf32> to vector<2x8x32xf32>
    %186 = vector.shape_cast %184 : vector<16x32xf32> to vector<2x8x32xf32>
    %187 = vector.shape_cast %179 : vector<8x8xbf16> to vector<1x8x8xbf16>
    %188 = vector.broadcast %187 : vector<1x8x8xbf16> to vector<2x8x8xbf16>
    %189 = arith.truncf %186 : vector<2x8x32xf32> to vector<2x8x32xbf16>
    "tpu.trace_start"() <{level = 10 : i32, message = "bij,bjd->bid"}> : () -> ()
    %cst_121 = arith.constant dense<0.000000e+00> : vector<2x8x32xf32>
    %190 = tpu.matmul %188, %189, %cst_121 {dimension_numbers = #tpu.dot_dimension_numbers<[2], [1], [1], [2], [0, 0, 0, 1, 1, 2], [0], [0]>} : vector<2x8x8xbf16>, vector<2x8x32xbf16>, vector<2x8x32xf32> -> vector<2x8x32xf32>
    "tpu.trace_stop"() : () -> ()
    %191 = vector.shape_cast %181 : vector<8x1xf32> to vector<1x8x1xf32>
    %192 = vector.broadcast %191 : vector<1x8x1xf32> to vector<2x8x32xf32>
    %193 = arith.mulf %192, %185 : vector<2x8x32xf32>
    %194 = arith.addf %193, %190 : vector<2x8x32xf32>
    %195 = vector.shape_cast %177 : vector<1x32xf32> to vector<1x1x32xf32>
    %196 = vector.broadcast %195 : vector<1x1x32xf32> to vector<2x8x32xf32>
    %197 = arith.addf %194, %196 : vector<2x8x32xf32>
    %cst_122 = arith.constant 0.000000e+00 : f32
    %198 = vector.broadcast %cst_122 : f32 to vector<2x8x32xf32>
    %199 = arith.maximumf %197, %198 : vector<2x8x32xf32>
    %200 = vector.shape_cast %199 : vector<2x8x32xf32> to vector<16x32xf32>
    %201 = arith.addf %200, %142 : vector<16x32xf32>
    %c0_123 = arith.constant 0 : index
    %c0_124 = arith.constant 0 : index
    %202 = vector.load %arg12[%c0_123, %c0_124] : memref<32x3xbf16, #tpu.memory_space<vmem>>, vector<32x3xbf16>
    %c0_125 = arith.constant 0 : index
    %c0_126 = arith.constant 0 : index
    %203 = vector.load %arg13[%c0_125, %c0_126] : memref<32x3xbf16, #tpu.memory_space<vmem>>, vector<32x3xbf16>
    %c0_127 = arith.constant 0 : index
    %c0_128 = arith.constant 0 : index
    %204 = vector.load %arg14[%c0_127, %c0_128] : memref<1x3xf32, #tpu.memory_space<vmem>>, vector<1x3xf32>
    %c0_129 = arith.constant 0 : index
    %c0_130 = arith.constant 0 : index
    %205 = vector.load %arg15[%c0_129, %c0_130] : memref<8x8xbf16, #tpu.memory_space<vmem>>, vector<8x8xbf16>
    %c0_131 = arith.constant 0 : index
    %c0_132 = arith.constant 0 : index
    %206 = vector.load %arg16[%c0_131, %c0_132] : memref<8x1xf32, #tpu.memory_space<vmem>>, vector<8x1xf32>
    %207 = arith.truncf %201 : vector<16x32xf32> to vector<16x32xbf16>
    %cst_133 = arith.constant dense<0.000000e+00> : vector<16x3xf32>
    %208 = tpu.matmul %207, %202, %cst_133 {dimension_numbers = #tpu.dot_dimension_numbers<[1], [0], [0], [1], [0, 0, 1, 1], [], []>} : vector<16x32xbf16>, vector<32x3xbf16>, vector<16x3xf32> -> vector<16x3xf32>
    %cst_134 = arith.constant dense<0.000000e+00> : vector<16x3xf32>
    %209 = tpu.matmul %207, %203, %cst_134 {dimension_numbers = #tpu.dot_dimension_numbers<[1], [0], [0], [1], [0, 0, 1, 1], [], []>} : vector<16x32xbf16>, vector<32x3xbf16>, vector<16x3xf32> -> vector<16x3xf32>
    %210 = vector.shape_cast %208 : vector<16x3xf32> to vector<2x8x3xf32>
    %211 = vector.shape_cast %209 : vector<16x3xf32> to vector<2x8x3xf32>
    %212 = vector.shape_cast %205 : vector<8x8xbf16> to vector<1x8x8xbf16>
    %213 = vector.broadcast %212 : vector<1x8x8xbf16> to vector<2x8x8xbf16>
    %214 = arith.truncf %211 : vector<2x8x3xf32> to vector<2x8x3xbf16>
    "tpu.trace_start"() <{level = 10 : i32, message = "bij,bjd->bid"}> : () -> ()
    %cst_135 = arith.constant dense<0.000000e+00> : vector<2x8x3xf32>
    %215 = tpu.matmul %213, %214, %cst_135 {dimension_numbers = #tpu.dot_dimension_numbers<[2], [1], [1], [2], [0, 0, 0, 1, 1, 2], [0], [0]>} : vector<2x8x8xbf16>, vector<2x8x3xbf16>, vector<2x8x3xf32> -> vector<2x8x3xf32>
    "tpu.trace_stop"() : () -> ()
    %216 = vector.shape_cast %206 : vector<8x1xf32> to vector<1x8x1xf32>
    %217 = vector.broadcast %216 : vector<1x8x1xf32> to vector<2x8x3xf32>
    %218 = arith.mulf %217, %210 : vector<2x8x3xf32>
    %219 = arith.addf %218, %215 : vector<2x8x3xf32>
    %220 = vector.shape_cast %204 : vector<1x3xf32> to vector<1x1x3xf32>
    %221 = vector.broadcast %220 : vector<1x1x3xf32> to vector<2x8x3xf32>
    %222 = arith.addf %219, %221 : vector<2x8x3xf32>
    %223 = vector.shape_cast %222 : vector<2x8x3xf32> to vector<16x3xf32>
    %c0_136 = arith.constant 0 : index
    %c0_137 = arith.constant 0 : index
    %224 = vector.load %arg17[%c0_136, %c0_137] : memref<16x3xf32, #tpu.memory_space<vmem>>, vector<16x3xf32>
    tpu.vector_store %arg17[%c0_136, %c0_137], %223 {strides = array<i32>} : memref<16x3xf32, #tpu.memory_space<vmem>>, vector<16x3xf32>,
    return
  }
  func.func @transform_0(%arg0: i32) -> (i32, i32) {
    %c0_i32 = arith.constant 0 : i32
    %c0_i32_0 = arith.constant 0 : i32
    return %arg0, %c0_i32 : i32, i32
  }
  func.func @transform_1(%arg0: i32) -> (i32, i32) {
    %c0_i32 = arith.constant 0 : i32
    %c0_i32_0 = arith.constant 0 : i32
    %c0_i32_1 = arith.constant 0 : i32
    return %c0_i32, %c0_i32_0 : i32, i32
  }
  func.func @transform_2(%arg0: i32) -> (i32, i32) {
    %c0_i32 = arith.constant 0 : i32
    %c0_i32_0 = arith.constant 0 : i32
    %c0_i32_1 = arith.constant 0 : i32
    return %c0_i32, %c0_i32_0 : i32, i32
  }
  func.func @transform_3(%arg0: i32) -> (i32, i32) {
    %c0_i32 = arith.constant 0 : i32
    %c0_i32_0 = arith.constant 0 : i32
    %c0_i32_1 = arith.constant 0 : i32
    return %c0_i32, %c0_i32_0 : i32, i32
  }
  func.func @transform_4(%arg0: i32) -> (i32, i32) {
    %c0_i32 = arith.constant 0 : i32
    %c0_i32_0 = arith.constant 0 : i32
    %c0_i32_1 = arith.constant 0 : i32
    return %c0_i32, %c0_i32_0 : i32, i32
  }
  func.func @transform_5(%arg0: i32) -> (i32, i32) {
    %c0_i32 = arith.constant 0 : i32
    %c0_i32_0 = arith.constant 0 : i32
    %c0_i32_1 = arith.constant 0 : i32
    return %c0_i32, %c0_i32_0 : i32, i32
  }
  func.func @transform_6(%arg0: i32) -> (i32, i32, i32) {
    %c0_i32 = arith.constant 0 : i32
    %c0_i32_0 = arith.constant 0 : i32
    %c0_i32_1 = arith.constant 0 : i32
    %c0_i32_2 = arith.constant 0 : i32
    return %c0_i32, %c0_i32_0, %c0_i32_1 : i32, i32, i32
  }
  func.func @transform_7(%arg0: i32) -> (i32, i32, i32) {
    %c0_i32 = arith.constant 0 : i32
    %c0_i32_0 = arith.constant 0 : i32
    %c0_i32_1 = arith.constant 0 : i32
    %c0_i32_2 = arith.constant 0 : i32
    return %c0_i32, %c0_i32_0, %c0_i32_1 : i32, i32, i32
  }
  func.func @transform_8(%arg0: i32) -> (i32, i32, i32) {
    %c0_i32 = arith.constant 0 : i32
    %c0_i32_0 = arith.constant 0 : i32
    %c0_i32_1 = arith.constant 0 : i32
    %c0_i32_2 = arith.constant 0 : i32
    return %c0_i32, %c0_i32_0, %c0_i32_1 : i32, i32, i32
  }
  func.func @transform_9(%arg0: i32) -> (i32, i32, i32) {
    %c0_i32 = arith.constant 0 : i32
    %c0_i32_0 = arith.constant 0 : i32
    %c0_i32_1 = arith.constant 0 : i32
    %c0_i32_2 = arith.constant 0 : i32
    return %c0_i32, %c0_i32_0, %c0_i32_1 : i32, i32, i32
  }
  func.func @transform_10(%arg0: i32) -> (i32, i32, i32) {
    %c0_i32 = arith.constant 0 : i32
    %c0_i32_0 = arith.constant 0 : i32
    %c0_i32_1 = arith.constant 0 : i32
    %c0_i32_2 = arith.constant 0 : i32
    return %c0_i32, %c0_i32_0, %c0_i32_1 : i32, i32, i32
  }
  func.func @transform_11(%arg0: i32) -> (i32, i32) {
    %c0_i32 = arith.constant 0 : i32
    %c0_i32_0 = arith.constant 0 : i32
    %c0_i32_1 = arith.constant 0 : i32
    return %c0_i32, %c0_i32_0 : i32, i32
  }
  func.func @transform_12(%arg0: i32) -> (i32, i32) {
    %c0_i32 = arith.constant 0 : i32
    %c0_i32_0 = arith.constant 0 : i32
    %c0_i32_1 = arith.constant 0 : i32
    return %c0_i32, %c0_i32_0 : i32, i32
  }
  func.func @transform_13(%arg0: i32) -> (i32, i32) {
    %c0_i32 = arith.constant 0 : i32
    %c0_i32_0 = arith.constant 0 : i32
    %c0_i32_1 = arith.constant 0 : i32
    return %c0_i32, %c0_i32_0 : i32, i32
  }
  func.func @transform_14(%arg0: i32) -> (i32, i32) {
    %c0_i32 = arith.constant 0 : i32
    %c0_i32_0 = arith.constant 0 : i32
    %c0_i32_1 = arith.constant 0 : i32
    return %c0_i32, %c0_i32_0 : i32, i32
  }
  func.func @transform_15(%arg0: i32) -> (i32, i32) {
    %c0_i32 = arith.constant 0 : i32
    %c0_i32_0 = arith.constant 0 : i32
    %c0_i32_1 = arith.constant 0 : i32
    return %c0_i32, %c0_i32_0 : i32, i32
  }
  func.func @transform_16(%arg0: i32) -> (i32, i32) {
    %c0_i32 = arith.constant 0 : i32
    %c0_i32_0 = arith.constant 0 : i32
    return %arg0, %c0_i32 : i32, i32
  }
}

</mosaic_0001>

<bundles_post_ra>
// kernel: tpu_custom_call.1
= control target key start
LH: loop header
LB: loop body
LE: loop exit
PB: predicated region body
PF: predicated region fallthrough
CT: control target
= control target key end

     0   :  { %s2832_s0 = inlined_call_operand.vmem [shape: f32[16,3], index: 0, kind: input, shape index: {}]   ;;  %s2833_s1 = inlined_call_operand.vmem [shape: bf16[3,32], index: 1, kind: input, shape index: {}]   ;;  %s2834_s2 = inlined_call_operand.vmem [shape: bf16[3,32], index: 2, kind: input, shape index: {}]   ;;  %s2835_s3 = inlined_call_operand.vmem [shape: f32[1,32], index: 3, kind: input, shape index: {}]   ;;  %s2836_s4 = inlined_call_operand.vmem [shape: bf16[8,8], index: 4, kind: input, shape index: {}]   ;;  %s2837_s5 = inlined_call_operand.vmem [shape: f32[8,1], index: 5, kind: input, shape index: {}]   ;;  %s2838_s6 = inlined_call_operand.vmem [shape: bf16[6,32,32], index: 6, kind: input, shape index: {}]   ;;  %s2839_s7 = inlined_call_operand.hbm [shape: bf16[6,32,32], index: 7, kind: input, shape index: {}]   ;;  %s2840_s8 = inlined_call_operand.vmem [shape: f32[6,1,32], index: 8, kind: input, shape index: {}]   ;;  %s2841_s9 = inlined_call_operand.vmem [shape: bf16[6,8,8], index: 9, kind: input, shape index: {}]   ;;  %s2842_s10 = inlined_call_operand.vmem [shape: f32[6,8,1], index: 10, kind: input, shape index: {}]   ;;  %s2843_s11 = inlined_call_operand.vmem [shape: bf16[32,3], index: 11, kind: input, shape index: {}]   ;;  %s2844_s12 = inlined_call_operand.vmem [shape: bf16[32,3], index: 12, kind: input, shape index: {}]   ;;  %s2845_s13 = inlined_call_operand.vmem [shape: f32[1,3], index: 13, kind: input, shape index: {}]   ;;  %s2846_s14 = inlined_call_operand.vmem [shape: bf16[8,8], index: 14, kind: input, shape index: {}]   ;;  %s2847_s15 = inlined_call_operand.vmem [shape: f32[8,1], index: 15, kind: input, shape index: {}]   ;;  %s2848_s16 = inlined_call_operand.vmem [shape: f32[16,3], index: 16, kind: output, shape index: {}]  }
   0x1   :  { %2850 = sst [smem:[#allocation5_spill]] %s2832_s0 }
   0x2   :  { %21 = vsyncpa [#allocation3], 0  ;;  %s2400_s21 = smov [#allocation2]   ;;  %s2376_s25 = scalar_lea.hbm %s2839_s7, 1536 }
   0x3   :  { %s41_s22 = sshll.u32 %s2400_s21, 4  ;;  %p2377_p0 = scmp.ne.s32.totalorder %s2839_s7, %s2376_s25  ;;  %s42_s22 = int_to_ptr.vmem [resolvable:$true] %s41_s22 }
   0x4   :  { %p2380_p1 = scmp.lt.u32.totalorder %s2376_s25, %s2839_s7 }
   0x6   :  { %p2382_p2 = pnand %p2380_p1, %p2377_p0 }
   0x8   :  { %2385 = shalt.err (!%p2382_p2)
}
   0x9   :  { %s2386_s30 = scalar_lea.vmem %s42_s22, 1536  ;;  %p2391_p4 = scmp.lt.s32.totalorder %s42_s22, %s42_s22 }
   0xa   :  { %p2387_p3 = scmp.ne.s32.totalorder %s42_s22, %s2386_s30  ;;  %p2392_p5 = scmp.lt.s32.totalorder %s2386_s30, %s2386_s30 }
   0xc   :  { %p2393_p6 = por %p2392_p5, %p2391_p4 }
   0xe   :  { %p2394_p7 = pnand %p2393_p6, %p2387_p3 }
  0x10   :  { %2397 = shalt.err (!%p2394_p7)
}
  0x11   :  { %s2401_s0 = smov 64   ;;  %s2402_s17 = smov 4  }
  0x12   :  { %47 = dma.hbm_to_vmem [thread:$0]  %s2839_s7, 1536, %s42_s22, [#allocation3], %s2401_s0, %s2401_s0, %s2402_s17  }
  0x13   :  { %2398 = dma.done.wait [#allocation3], 1536  }
  0x14   :  { %2399 = vsyncadd [#allocation3], 4294965760  ;;  %vm80_vm0 = vcmask 1040384   ;;  %v2403_v0 = vmov 0.0   ;;  %vm81_vm1 = vcmask 1041408   ;;  %v2404_v1 = vmov 65535  }
  0x15   :  { %2125 = vmatprep.subr.bf16.mxu1 %v2403_v0  ;;  %2119 = vmatprep.subr.bf16.mxu0 %v2403_v0  ;;  %v82_v2 = vsel %vm80_vm0, 4294967295, %v2404_v1  ;;  %vm2405_vm2 = vmmov 0   ;;  %v71_v4 = vld [vmem:[%s2834_s2] sm:$0x3]  ;;  %s2851_s23 = sld [smem:[#allocation5_spill]]  ;;  %vm76_vm3 = vcmask 23552  }
  0x16   :  { %2127 = vmatprep.mubr.msk.bf16.mxu1 %vm2405_vm2, %v2403_v0  ;;  %2121 = vmatprep.mubr.msk.bf16.mxu0 %vm2405_vm2, %v2403_v0  ;;  %v83_v3 = vsel %vm81_vm1, %v82_v2, 0  ;;  %v70_v8 = vld [vmem:[%s2833_s1] sm:$0x3]  ;;  %v2406_v12 = vmov 0   ;;  %v1990_v14 = vld [vmem:[%s2842_s10 + $0x18] sm:$0xff]  ;;  %v2022_v15 = vld [vmem:[%s2842_s10 + $0x28] sm:$0xff] }
  0x17   :  { %v129_v7 = vand.u32 %v83_v3, %v71_v4  ;;  %v85_v10 = vand.u32 %v83_v3, %v70_v8  ;;  %v74_v11 = vld [vmem:[%s2837_s5] sm:$0xff]  ;;  %2346 = vset.pattern.permute.xlu0 %v2406_v12  ;;  %2347 = vset.pattern.permute.xlu1 %v2406_v12  ;;  %vm178_vm4 = vcmask 1043456   ;;  %vm174_vm5 = vcmask 64512   ;;  %v2350_v31 = vld [vmem:[%s2838_s6 + $0x8] sm:$0xff]   ;;  %v2352_v2 = vld [vmem:[%s2838_s6 + $0x10] sm:$0xff]  }
  0x18   :  { %267 = vperm.xlu0 %2346, %v74_v11   ;;  %v294_v13 = vld [vmem:[%s2842_s10] sm:$0xff]  ;;  %v2351_v32 = vld [vmem:[#allocation2 + $0x8] sm:$0xff]   ;;  %vm308_vm6 = vcmask 261120   ;;  %v2353_v3 = vld [vmem:[#allocation2 + $0x10] sm:$0xff]  }
  0x19   :  { %2126 = vmatpush3.bf16.msra.mxu1 %v129_v7  ;;  %2120 = vmatpush3.bf16.msra.mxu0 %v85_v10  ;;  %v73_v26 = vld [vmem:[%s2836_s4] sm:$0xf]  ;;  %v2354_v4 = vld [vmem:[%s2838_s6 + $0x18] sm:$0xff]  }
  0x1a   :  { %2137 = vmatprep.subr.bf16.mxu1 %v2403_v0  ;;  %2131 = vmatprep.subr.bf16.mxu0 %v2403_v0  ;;  %v2348_v29 = vld [vmem:[%s2838_s6] sm:$0xff]  }
  0x1b   :  { %v68_v5 = vld [vmem:[%s2851_s23] sm:$0xff]  ;;  %v69_v6 = vld [vmem:[%s2851_s23 + $0x8] sm:$0xff] }
  0x1c   :  { %v75_v9 = vpack.c.bf16 %v69_v6, %v68_v5  ;;  %499 = vperm.xlu0 %2346, %v294_v13   ;;  %v2349_v30 = vld [vmem:[#allocation2] sm:$0xff]   ;;  %v2355_v5 = vld [vmem:[#allocation2 + $0x18] sm:$0xff]   ;;  %v1958_v6 = vld [vmem:[%s2842_s10 + $0x8] sm:$0xff] }
  0x1d   :  { %v1942_v35 = vld [vmem:[%s2835_s3] ss:$0 sm:$0xff]  ;;  %735 = vperm.xlu1 %2347, %v1958_v6  }
  0x1e   :  { %2128 = vmatmul.mubr.msk.bf16.vlgmr.msra.gmra.mrb[0].mxu1 %vm76_vm3, %v75_v9  ;;  %2122 = vmatmul.mubr.msk.bf16.vlgmr.msra.gmra.mrb[0].mxu0 %vm76_vm3, %v75_v9  ;;  %v293_v63 = vld [vmem:[%s2841_s9] sm:$0xf] }
  0x1f   :  { %2139 = vmatprep.mubr.msk.bf16.mxu1 %vm2405_vm2, %v2403_v0  ;;  %2133 = vmatprep.mubr.msk.bf16.mxu0 %vm2405_vm2, %v2403_v0  ;;  %v1951_v9 = vld [vmem:[%s2840_s8] ss:$0 sm:$0xff] }
  0x20   :  { %1209 = vperm.xlu0 %2346, %v1990_v14  }
  0x24   :  { %1683 = vperm.xlu0 %2346, %v2022_v15  }
  0x97   :  { %v268_v33 = vpop.permute.xlu0 %267 }
  0x9b   :  { %v500_v7 = vpop.permute.xlu0 %499 }
  0xf1   :  { %v165_v16 = vpop.f32.mrb[0].mxu1  ;;  %v121_v19 = vpop.f32.mrb[0].mxu0 }
  0xf2   :  { %v172_v17 = vpack.c.bf16 %v165_v16, %v165_v16  ;;  %v2129_v18 = vpop.f32.mrb[1].mxu1  ;;  %v2123_v21 = vpop.f32.mrb[1].mxu0  ;;  %v270_v34 = vmul.f32 %v268_v33, %v121_v19 }
  0xf3   :  { %v168_v20 = vpop.f32.mrb[2].mxu1  ;;  %v124_v25 = vpop.f32.mrb[2].mxu0 }
  0xf4   :  { %v180_v22 = vsel %vm178_vm4, %v172_v17, 0  ;;  %v173_v23 = vpack.c.bf16 %v168_v20, %v168_v20  ;;  %v2130_v24 = vpop.f32.mrb[3].mxu1  ;;  %v2124_v27 = vpop.f32.mrb[3].mxu0  ;;  %v271_v37 = vmul.f32 %v268_v33, %v124_v25 }
  0xf5   :  { %2132 = vmatpush3.bf16.msra.mxu0 %v180_v22  ;;  %v2006_v27 = vld [vmem:[%s2842_s10 + $0x20] sm:$0xff] }
  0xf6   :  { %v223_v28 = vsel %vm178_vm4, %v173_v23, 0  ;;  %2143 = vmatprep.subr.bf16.mxu0 %v2403_v0 }
  0xf7   :  { %2138 = vmatpush3.bf16.msra.mxu1 %v223_v28  ;;  %v1712_v28 = vld [vmem:[%s2847_s15] sm:$0xff] }
  0xf8   :  { %2134 = vmatmul.mubr.msk.bf16.vlgmr.msra.gmra.mrb[4].mxu0 %vm174_vm5, %v73_v26  ;;  %2151 = vmatprep.subr.bf16.mxu1 %v2403_v0 }
  0xf9   :  { %2147 = vmatprep.mubr.msk.bf16.mxu0 %vm2405_vm2, %v2403_v0  ;;  %2144 = vmatpush3.bf16.msra.mxu0 %v2348_v29 }
  0xfa   :  { %2140 = vmatmul.mubr.msk.bf16.vlgmr.msra.gmra.mrb[4].mxu1 %vm174_vm5, %v73_v26  ;;  %2145 = vmatprep.subr.bf16.mxu0 %v2403_v0  ;;  %v1974_v26 = vld [vmem:[%s2842_s10 + $0x10] sm:$0xff] }
  0xfb   :  { %2155 = vmatprep.mubr.msk.bf16.mxu1 %vm2405_vm2, %v2403_v0  ;;  %2152 = vmatpush3.bf16.msra.mxu1 %v2349_v30 }
  0xfc   :  { %2153 = vmatprep.subr.bf16.mxu1 %v2403_v0  ;;  %973 = vperm.xlu1 %2347, %v1974_v26  }
  0xfd   :  { %2146 = vmatpush3.bf16.msra.mxu0 %v2350_v31 }
  0xfe   :  { %2159 = vmatprep.subr.bf16.mxu0 %v2403_v0 }
  0xff   :  { %2154 = vmatpush3.bf16.msra.mxu1 %v2351_v32 }
 0x100   :  { %2165 = vmatprep.subr.bf16.mxu1 %v2403_v0  ;;  %1447 = vperm.xlu1 %2347, %v2006_v27  }
 0x104   :  { %1916 = vperm.xlu1 %2347, %v1712_v28  }
 0x1cb   :  { %v216_v36 = vpop.f32.mrb[4].mxu0 }
 0x1cc   :  { %v272_v38 = vadd.f32 %v270_v34, %v216_v36  ;;  %v2135_v39 = vpop.f32.mrb[5].mxu0 }
 0x1cd   :  { %v219_v40 = vpop.f32.mrb[6].mxu0  ;;  %v259_v41 = vpop.f32.mrb[4].mxu1 }
 0x1ce   :  { %v2568_v42 = vadd.f32 %v1942_v35, %v272_v38  ;;  %v273_v43 = vadd.f32 %v271_v37, %v259_v41  ;;  %v2136_v44 = vpop.f32.mrb[7].mxu0  ;;  %v2141_v45 = vpop.f32.mrb[5].mxu1  ;;  %v1957_v40 = vld [vmem:[%s2841_s9 + $0x4] sm:$0xf] }
 0x1cf   :  { %v262_v46 = vpop.f32.mrb[6].mxu1  ;;  %v2357_v44 = vld [vmem:[#allocation2 + $0x20] sm:$0xff]   ;;  %v2358_v45 = vld [vmem:[%s2838_s6 + $0x28] sm:$0xff]  }
 0x1d0   :  { %v2570_v47 = vadd.f32 %v1942_v35, %v273_v43  ;;  %v2142_v48 = vpop.f32.mrb[7].mxu1  ;;  %v282_v49 = vmax.f32 %v2568_v42, 0.0  ;;  %v2356_v43 = vld [vmem:[%s2838_s6 + $0x20] sm:$0xff]   ;;  %v2359_v46 = vld [vmem:[#allocation2 + $0x28] sm:$0xff]  }
 0x1d1   :  { %v736_v48 = vpop.permute.xlu1 %735 }
 0x1d2   :  { %v283_v50 = vmax.f32 %v2570_v47, 0.0 }
 0x1d4   :  { %v295_v51 = vpack.c.bf16 %v283_v50, %v282_v49 }
 0x1d6   :  { %2148 = vmatmul.mubr.msk.bf16.vlgmr.msra.gmra.mrb[8].mxu0 %vm308_vm6, %v295_v51  ;;  %2156 = vmatmul.mubr.msk.bf16.vlgmr.msra.gmra.mrb[8].mxu1 %vm308_vm6, %v295_v51 }
 0x1d7   :  { %2161 = vmatprep.mubr.msk.bf16.mxu0 %vm2405_vm2, %v2403_v0  ;;  %2167 = vmatprep.mubr.msk.bf16.mxu1 %vm2405_vm2, %v2403_v0 }
 0x2a9   :  { %v346_v52 = vpop.f32.mrb[8].mxu0  ;;  %v399_v53 = vpop.f32.mrb[8].mxu1 }
 0x2aa   :  { %v406_v54 = vpack.c.bf16 %v399_v53, %v399_v53  ;;  %v2149_v55 = vpop.f32.mrb[9].mxu0  ;;  %v2157_v56 = vpop.f32.mrb[9].mxu1  ;;  %v502_v8 = vmul.f32 %v500_v7, %v346_v52  ;;  %v1967_v52 = vld [vmem:[%s2840_s8 + $0x1] ss:$0 sm:$0xff] }
 0x2ab   :  { %v349_v57 = vpop.f32.mrb[10].mxu0  ;;  %v402_v58 = vpop.f32.mrb[10].mxu1 }
 0x2ac   :  { %v412_v59 = vsel %vm178_vm4, %v406_v54, 0  ;;  %v407_v60 = vpack.c.bf16 %v402_v58, %v402_v58  ;;  %v2150_v61 = vpop.f32.mrb[11].mxu0  ;;  %v2158_v62 = vpop.f32.mrb[11].mxu1  ;;  %v503_v11 = vmul.f32 %v500_v7, %v349_v57 }
 0x2ad   :  { %2160 = vmatpush3.bf16.msra.mxu0 %v412_v59 }
 0x2ae   :  { %v455_v1 = vsel %vm178_vm4, %v407_v60, 0  ;;  %2171 = vmatprep.subr.bf16.mxu0 %v2403_v0 }
 0x2af   :  { %2166 = vmatpush3.bf16.msra.mxu1 %v455_v1 }
 0x2b0   :  { %2162 = vmatmul.mubr.msk.bf16.vlgmr.msra.gmra.mrb[12].mxu0 %vm174_vm5, %v293_v63  ;;  %2179 = vmatprep.subr.bf16.mxu1 %v2403_v0 }
 0x2b1   :  { %2175 = vmatprep.mubr.msk.bf16.mxu0 %vm2405_vm2, %v2403_v0  ;;  %2172 = vmatpush3.bf16.msra.mxu0 %v2352_v2 }
 0x2b2   :  { %2168 = vmatmul.mubr.msk.bf16.vlgmr.msra.gmra.mrb[12].mxu1 %vm174_vm5, %v293_v63  ;;  %2173 = vmatprep.subr.bf16.mxu0 %v2403_v0 }
 0x2b3   :  { %2183 = vmatprep.mubr.msk.bf16.mxu1 %vm2405_vm2, %v2403_v0  ;;  %2180 = vmatpush3.bf16.msra.mxu1 %v2353_v3 }
 0x2b4   :  { %2181 = vmatprep.subr.bf16.mxu1 %v2403_v0 }
 0x2b5   :  { %2174 = vmatpush3.bf16.msra.mxu0 %v2354_v4 }
 0x2b6   :  { %2187 = vmatprep.subr.bf16.mxu0 %v2403_v0 }
 0x2b7   :  { %2182 = vmatpush3.bf16.msra.mxu1 %v2355_v5 }
 0x2b8   :  { %2193 = vmatprep.subr.bf16.mxu1 %v2403_v0 }
 0x383   :  { %v448_v10 = vpop.f32.mrb[12].mxu0 }
 0x384   :  { %v504_v12 = vadd.f32 %v502_v8, %v448_v10  ;;  %v2163_v13 = vpop.f32.mrb[13].mxu0 }
 0x385   :  { %v451_v14 = vpop.f32.mrb[14].mxu0  ;;  %v491_v15 = vpop.f32.mrb[12].mxu1 }
 0x386   :  { %v512_v16 = vadd.f32 %v1951_v9, %v504_v12  ;;  %v505_v17 = vadd.f32 %v503_v11, %v491_v15  ;;  %v2164_v18 = vpop.f32.mrb[15].mxu0  ;;  %v2169_v19 = vpop.f32.mrb[13].mxu1  ;;  %v1973_v15 = vld [vmem:[%s2841_s9 + $0x8] sm:$0xf] }
 0x387   :  { %v494_v20 = vpop.f32.mrb[14].mxu1  ;;  %v2361_v18 = vld [vmem:[#allocation2 + $0x30] sm:$0xff]   ;;  %v2362_v19 = vld [vmem:[%s2838_s6 + $0x38] sm:$0xff]  }
 0x388   :  { %v513_v21 = vadd.f32 %v1951_v9, %v505_v17  ;;  %v2170_v22 = vpop.f32.mrb[15].mxu1  ;;  %v514_v23 = vmax.f32 %v512_v16, 0.0  ;;  %v2360_v17 = vld [vmem:[%s2838_s6 + $0x30] sm:$0xff]   ;;  %v2363_v20 = vld [vmem:[#allocation2 + $0x38] sm:$0xff]  }
 0x38a   :  { %v515_v24 = vmax.f32 %v513_v21, 0.0  ;;  %v974_v21 = vpop.permute.xlu1 %973 }
 0x38c   :  { %v532_v25 = vpack.c.bf16 %v515_v24, %v514_v23  ;;  %v1983_v23 = vld [vmem:[%s2840_s8 + $0x2] ss:$0 sm:$0xff] }
 0x38e   :  { %2176 = vmatmul.mubr.msk.bf16.vlgmr.msra.gmra.mrb[16].mxu0 %vm308_vm6, %v532_v25  ;;  %2184 = vmatmul.mubr.msk.bf16.vlgmr.msra.gmra.mrb[16].mxu1 %vm308_vm6, %v532_v25 }
 0x38f   :  { %2189 = vmatprep.mubr.msk.bf16.mxu0 %vm2405_vm2, %v2403_v0  ;;  %2195 = vmatprep.mubr.msk.bf16.mxu1 %vm2405_vm2, %v2403_v0 }
 0x461   :  { %v582_v29 = vpop.f32.mrb[16].mxu0  ;;  %v635_v30 = vpop.f32.mrb[16].mxu1 }
 0x462   :  { %v642_v31 = vpack.c.bf16 %v635_v30, %v635_v30  ;;  %v2177_v32 = vpop.f32.mrb[17].mxu0  ;;  %v2185_v33 = vpop.f32.mrb[17].mxu1  ;;  %v738_v51 = vmul.f32 %v736_v48, %v582_v29 }
 0x463   :  { %v585_v34 = vpop.f32.mrb[18].mxu0  ;;  %v638_v35 = vpop.f32.mrb[18].mxu1 }
 0x464   :  { %v648_v36 = vsel %vm178_vm4, %v642_v31, 0  ;;  %v643_v37 = vpack.c.bf16 %v638_v35, %v638_v35  ;;  %v2178_v38 = vpop.f32.mrb[19].mxu0  ;;  %v2186_v39 = vpop.f32.mrb[19].mxu1  ;;  %v739_v54 = vmul.f32 %v736_v48, %v585_v34 }
 0x465   :  { %2188 = vmatpush3.bf16.msra.mxu0 %v648_v36 }
 0x466   :  { %v691_v41 = vsel %vm178_vm4, %v643_v37, 0  ;;  %2199 = vmatprep.subr.bf16.mxu0 %v2403_v0 }
 0x467   :  { %2194 = vmatpush3.bf16.msra.mxu1 %v691_v41 }
 0x468   :  { %2190 = vmatmul.mubr.msk.bf16.vlgmr.msra.gmra.mrb[20].mxu0 %vm174_vm5, %v1957_v40  ;;  %2207 = vmatprep.subr.bf16.mxu1 %v2403_v0 }
 0x469   :  { %2203 = vmatprep.mubr.msk.bf16.mxu0 %vm2405_vm2, %v2403_v0  ;;  %2200 = vmatpush3.bf16.msra.mxu0 %v2356_v43 }
 0x46a   :  { %2196 = vmatmul.mubr.msk.bf16.vlgmr.msra.gmra.mrb[20].mxu1 %vm174_vm5, %v1957_v40  ;;  %2201 = vmatprep.subr.bf16.mxu0 %v2403_v0 }
 0x46b   :  { %2211 = vmatprep.mubr.msk.bf16.mxu1 %vm2405_vm2, %v2403_v0  ;;  %2208 = vmatpush3.bf16.msra.mxu1 %v2357_v44 }
 0x46c   :  { %2209 = vmatprep.subr.bf16.mxu1 %v2403_v0 }
 0x46d   :  { %2202 = vmatpush3.bf16.msra.mxu0 %v2358_v45 }
 0x46e   :  { %2215 = vmatprep.subr.bf16.mxu0 %v2403_v0 }
 0x46f   :  { %2210 = vmatpush3.bf16.msra.mxu1 %v2359_v46 }
 0x470   :  { %2221 = vmatprep.subr.bf16.mxu1 %v2403_v0 }
 0x53b   :  { %v684_v53 = vpop.f32.mrb[20].mxu0 }
 0x53c   :  { %v740_v55 = vadd.f32 %v738_v51, %v684_v53  ;;  %v2191_v56 = vpop.f32.mrb[21].mxu0 }
 0x53d   :  { %v687_v57 = vpop.f32.mrb[22].mxu0  ;;  %v727_v58 = vpop.f32.mrb[20].mxu1 }
 0x53e   :  { %v748_v59 = vadd.f32 %v1967_v52, %v740_v55  ;;  %v741_v60 = vadd.f32 %v739_v54, %v727_v58  ;;  %v2192_v61 = vpop.f32.mrb[23].mxu0  ;;  %v2197_v62 = vpop.f32.mrb[21].mxu1  ;;  %v1989_v55 = vld [vmem:[%s2841_s9 + $0xc] sm:$0xf]  ;;  %v2364_v57 = vld [vmem:[%s2838_s6 + $0x40] sm:$0xff]  }
 0x53f   :  { %v730_v63 = vpop.f32.mrb[22].mxu1  ;;  %v2365_v58 = vld [vmem:[#allocation2 + $0x40] sm:$0xff]   ;;  %v1210_v61 = vpop.permute.xlu0 %1209 }
 0x540   :  { %v750_v1 = vmax.f32 %v748_v59, 0.0  ;;  %v749_v2 = vadd.f32 %v1967_v52, %v741_v60  ;;  %v2198_v3 = vpop.f32.mrb[23].mxu1  ;;  %v2366_v59 = vld [vmem:[%s2838_s6 + $0x48] sm:$0xff]   ;;  %v1999_v63 = vld [vmem:[%s2840_s8 + $0x3] ss:$0 sm:$0xff] }
 0x541   :  { %v2367_v60 = vld [vmem:[#allocation2 + $0x48] sm:$0xff]  }
 0x542   :  { %v751_v4 = vmax.f32 %v749_v2, 0.0  ;;  %v2656_v5 = vadd.f32 %v750_v1, %v282_v49 }
 0x544   :  { %v2660_v6 = vadd.f32 %v751_v4, %v283_v50 }
 0x546   :  { %v770_v7 = vpack.c.bf16 %v2660_v6, %v2656_v5 }
 0x548   :  { %2204 = vmatmul.mubr.msk.bf16.vlgmr.msra.gmra.mrb[24].mxu0 %vm308_vm6, %v770_v7  ;;  %2212 = vmatmul.mubr.msk.bf16.vlgmr.msra.gmra.mrb[24].mxu1 %vm308_vm6, %v770_v7 }
 0x549   :  { %2217 = vmatprep.mubr.msk.bf16.mxu0 %vm2405_vm2, %v2403_v0  ;;  %2223 = vmatprep.mubr.msk.bf16.mxu1 %vm2405_vm2, %v2403_v0 }
 0x61b   :  { %v820_v42 = vpop.f32.mrb[24].mxu0  ;;  %v873_v49 = vpop.f32.mrb[24].mxu1 }
 0x61c   :  { %v880_v8 = vpack.c.bf16 %v873_v49, %v873_v49  ;;  %v2205_v9 = vpop.f32.mrb[25].mxu0  ;;  %v2213_v47 = vpop.f32.mrb[25].mxu1  ;;  %v976_v22 = vmul.f32 %v974_v21, %v820_v42 }
 0x61d   :  { %v823_v50 = vpop.f32.mrb[26].mxu0  ;;  %v876_v10 = vpop.f32.mrb[26].mxu1 }
 0x61e   :  { %v886_v11 = vsel %vm178_vm4, %v880_v8, 0  ;;  %v881_v12 = vpack.c.bf16 %v876_v10, %v876_v10  ;;  %v2206_v13 = vpop.f32.mrb[27].mxu0  ;;  %v2214_v14 = vpop.f32.mrb[27].mxu1  ;;  %v977_v25 = vmul.f32 %v974_v21, %v823_v50 }
 0x61f   :  { %2216 = vmatpush3.bf16.msra.mxu0 %v886_v11 }
 0x620   :  { %v929_v16 = vsel %vm178_vm4, %v881_v12, 0  ;;  %2227 = vmatprep.subr.bf16.mxu0 %v2403_v0 }
 0x621   :  { %2222 = vmatpush3.bf16.msra.mxu1 %v929_v16 }
 0x622   :  { %2218 = vmatmul.mubr.msk.bf16.vlgmr.msra.gmra.mrb[28].mxu0 %vm174_vm5, %v1973_v15  ;;  %2235 = vmatprep.subr.bf16.mxu1 %v2403_v0 }
 0x623   :  { %2231 = vmatprep.mubr.msk.bf16.mxu0 %vm2405_vm2, %v2403_v0  ;;  %2228 = vmatpush3.bf16.msra.mxu0 %v2360_v17 }
 0x624   :  { %2224 = vmatmul.mubr.msk.bf16.vlgmr.msra.gmra.mrb[28].mxu1 %vm174_vm5, %v1973_v15  ;;  %2229 = vmatprep.subr.bf16.mxu0 %v2403_v0 }
 0x625   :  { %2239 = vmatprep.mubr.msk.bf16.mxu1 %vm2405_vm2, %v2403_v0  ;;  %2236 = vmatpush3.bf16.msra.mxu1 %v2361_v18 }
 0x626   :  { %2237 = vmatprep.subr.bf16.mxu1 %v2403_v0 }
 0x627   :  { %2230 = vmatpush3.bf16.msra.mxu0 %v2362_v19 }
 0x628   :  { %2243 = vmatprep.subr.bf16.mxu0 %v2403_v0 }
 0x629   :  { %2238 = vmatpush3.bf16.msra.mxu1 %v2363_v20 }
 0x62a   :  { %2249 = vmatprep.subr.bf16.mxu1 %v2403_v0 }
 0x6f5   :  { %v922_v24 = vpop.f32.mrb[28].mxu0 }
 0x6f6   :  { %v978_v26 = vadd.f32 %v976_v22, %v922_v24  ;;  %v2219_v27 = vpop.f32.mrb[29].mxu0 }
 0x6f7   :  { %v925_v28 = vpop.f32.mrb[30].mxu0  ;;  %v965_v29 = vpop.f32.mrb[28].mxu1 }
 0x6f8   :  { %v986_v30 = vadd.f32 %v1983_v23, %v978_v26  ;;  %v979_v31 = vadd.f32 %v977_v25, %v965_v29  ;;  %v2220_v32 = vpop.f32.mrb[31].mxu0  ;;  %v2225_v33 = vpop.f32.mrb[29].mxu1  ;;  %v2005_v26 = vld [vmem:[%s2841_s9 + $0x10] sm:$0xf] }
 0x6f9   :  { %v968_v34 = vpop.f32.mrb[30].mxu1  ;;  %v2368_v28 = vld [vmem:[%s2838_s6 + $0x50] sm:$0xff]   ;;  %v1448_v32 = vpop.permute.xlu1 %1447 }
 0x6fa   :  { %v987_v35 = vadd.f32 %v1983_v23, %v979_v31  ;;  %v2226_v36 = vpop.f32.mrb[31].mxu1  ;;  %v988_v37 = vmax.f32 %v986_v30, 0.0  ;;  %v2369_v29 = vld [vmem:[#allocation2 + $0x50] sm:$0xff]   ;;  %v2370_v30 = vld [vmem:[%s2838_s6 + $0x58] sm:$0xff]   ;;  %v2015_v34 = vld [vmem:[%s2840_s8 + $0x4] ss:$0 sm:$0xff] }
 0x6fb   :  { %v2371_v31 = vld [vmem:[#allocation2 + $0x58] sm:$0xff]  }
 0x6fc   :  { %v989_v38 = vmax.f32 %v987_v35, 0.0 }
 0x6fe   :  { %v1006_v39 = vpack.c.bf16 %v989_v38, %v988_v37 }
 0x700   :  { %2232 = vmatmul.mubr.msk.bf16.vlgmr.msra.gmra.mrb[32].mxu0 %vm308_vm6, %v1006_v39  ;;  %2240 = vmatmul.mubr.msk.bf16.vlgmr.msra.gmra.mrb[32].mxu1 %vm308_vm6, %v1006_v39 }
 0x701   :  { %2245 = vmatprep.mubr.msk.bf16.mxu0 %vm2405_vm2, %v2403_v0  ;;  %2251 = vmatprep.mubr.msk.bf16.mxu1 %vm2405_vm2, %v2403_v0 }
 0x7d3   :  { %v1056_v40 = vpop.f32.mrb[32].mxu0  ;;  %v1109_v41 = vpop.f32.mrb[32].mxu1 }
 0x7d4   :  { %v1116_v43 = vpack.c.bf16 %v1109_v41, %v1109_v41  ;;  %v2233_v44 = vpop.f32.mrb[33].mxu0  ;;  %v2241_v45 = vpop.f32.mrb[33].mxu1  ;;  %v1212_v62 = vmul.f32 %v1210_v61, %v1056_v40 }
 0x7d5   :  { %v1059_v46 = vpop.f32.mrb[34].mxu0  ;;  %v1112_v48 = vpop.f32.mrb[34].mxu1 }
 0x7d6   :  { %v1122_v51 = vsel %vm178_vm4, %v1116_v43, 0  ;;  %v1117_v52 = vpack.c.bf16 %v1112_v48, %v1112_v48  ;;  %v2234_v53 = vpop.f32.mrb[35].mxu0  ;;  %v2242_v54 = vpop.f32.mrb[35].mxu1  ;;  %v1213_v2 = vmul.f32 %v1210_v61, %v1059_v46 }
 0x7d7   :  { %2244 = vmatpush3.bf16.msra.mxu0 %v1122_v51 }
 0x7d8   :  { %v1165_v56 = vsel %vm178_vm4, %v1117_v52, 0  ;;  %2255 = vmatprep.subr.bf16.mxu0 %v2403_v0 }
 0x7d9   :  { %2250 = vmatpush3.bf16.msra.mxu1 %v1165_v56 }
 0x7da   :  { %2246 = vmatmul.mubr.msk.bf16.vlgmr.msra.gmra.mrb[36].mxu0 %vm174_vm5, %v1989_v55  ;;  %2263 = vmatprep.subr.bf16.mxu1 %v2403_v0 }
 0x7db   :  { %2259 = vmatprep.mubr.msk.bf16.mxu0 %vm2405_vm2, %v2403_v0  ;;  %2256 = vmatpush3.bf16.msra.mxu0 %v2364_v57 }
 0x7dc   :  { %2252 = vmatmul.mubr.msk.bf16.vlgmr.msra.gmra.mrb[36].mxu1 %vm174_vm5, %v1989_v55  ;;  %2257 = vmatprep.subr.bf16.mxu0 %v2403_v0 }
 0x7dd   :  { %2267 = vmatprep.mubr.msk.bf16.mxu1 %vm2405_vm2, %v2403_v0  ;;  %2264 = vmatpush3.bf16.msra.mxu1 %v2365_v58 }
 0x7de   :  { %2265 = vmatprep.subr.bf16.mxu1 %v2403_v0 }
 0x7df   :  { %2258 = vmatpush3.bf16.msra.mxu0 %v2366_v59 }
 0x7e0   :  { %2271 = vmatprep.subr.bf16.mxu0 %v2403_v0 }
 0x7e1   :  { %2266 = vmatpush3.bf16.msra.mxu1 %v2367_v60 }
 0x7e2   :  { %2277 = vmatprep.subr.bf16.mxu1 %v2403_v0 }
 0x8ad   :  { %v1158_v1 = vpop.f32.mrb[36].mxu0 }
 0x8ae   :  { %v1214_v3 = vadd.f32 %v1212_v62, %v1158_v1  ;;  %v2247_v4 = vpop.f32.mrb[37].mxu0 }
 0x8af   :  { %v1161_v7 = vpop.f32.mrb[38].mxu0  ;;  %v1201_v42 = vpop.f32.mrb[36].mxu1 }
 0x8b0   :  { %v1222_v49 = vadd.f32 %v1999_v63, %v1214_v3  ;;  %v1215_v8 = vadd.f32 %v1213_v2, %v1201_v42  ;;  %v2248_v9 = vpop.f32.mrb[39].mxu0  ;;  %v2253_v47 = vpop.f32.mrb[37].mxu1  ;;  %v2021_v3 = vld [vmem:[%s2841_s9 + $0x14] sm:$0xf]  ;;  %v2372_v7 = vld [vmem:[%s2843_s11] sm:$0xff]  }
 0x8b1   :  { %v1204_v50 = vpop.f32.mrb[38].mxu1  ;;  %v2373_v42 = vld [vmem:[%s2844_s12] sm:$0xff]   ;;  %v1684_v9 = vpop.permute.xlu0 %1683 }
 0x8b2   :  { %v1224_v10 = vmax.f32 %v1222_v49, 0.0  ;;  %v1223_v11 = vadd.f32 %v1999_v63, %v1215_v8  ;;  %v2254_v12 = vpop.f32.mrb[39].mxu1  ;;  %v2374_v49 = vld [vmem:[%s2843_s11 + $0x8] sm:$0xff]   ;;  %v2031_v50 = vld [vmem:[%s2840_s8 + $0x5] ss:$0 sm:$0xff] }
 0x8b3   :  { %v2375_v8 = vld [vmem:[%s2844_s12 + $0x8] sm:$0xff]  }
 0x8b4   :  { %v1225_v13 = vmax.f32 %v1223_v11, 0.0  ;;  %v2729_v14 = vadd.f32 %v1224_v10, %v2656_v5 }
 0x8b6   :  { %v2732_v15 = vadd.f32 %v1225_v13, %v2660_v6 }
 0x8b8   :  { %v1244_v16 = vpack.c.bf16 %v2732_v15, %v2729_v14 }
 0x8ba   :  { %2260 = vmatmul.mubr.msk.bf16.vlgmr.msra.gmra.mrb[40].mxu0 %vm308_vm6, %v1244_v16  ;;  %2268 = vmatmul.mubr.msk.bf16.vlgmr.msra.gmra.mrb[40].mxu1 %vm308_vm6, %v1244_v16 }
 0x8bb   :  { %2273 = vmatprep.mubr.msk.bf16.mxu0 %vm2405_vm2, %v2403_v0  ;;  %2279 = vmatprep.mubr.msk.bf16.mxu1 %vm2405_vm2, %v2403_v0 }
 0x98d   :  { %v1294_v17 = vpop.f32.mrb[40].mxu0  ;;  %v1347_v18 = vpop.f32.mrb[40].mxu1 }
 0x98e   :  { %v1354_v5 = vpack.c.bf16 %v1347_v18, %v1347_v18  ;;  %v2261_v19 = vpop.f32.mrb[41].mxu0  ;;  %v2269_v20 = vpop.f32.mrb[41].mxu1  ;;  %v1450_v33 = vmul.f32 %v1448_v32, %v1294_v17 }
 0x98f   :  { %v1297_v6 = vpop.f32.mrb[42].mxu0  ;;  %v1350_v21 = vpop.f32.mrb[42].mxu1 }
 0x990   :  { %v1360_v22 = vsel %vm178_vm4, %v1354_v5, 0  ;;  %v1355_v23 = vpack.c.bf16 %v1350_v21, %v1350_v21  ;;  %v2262_v24 = vpop.f32.mrb[43].mxu0  ;;  %v2270_v25 = vpop.f32.mrb[43].mxu1  ;;  %v1451_v36 = vmul.f32 %v1448_v32, %v1297_v6 }
 0x991   :  { %2272 = vmatpush3.bf16.msra.mxu0 %v1360_v22 }
 0x992   :  { %v1403_v27 = vsel %vm178_vm4, %v1355_v23, 0  ;;  %2283 = vmatprep.subr.bf16.mxu0 %v2403_v0 }
 0x993   :  { %2278 = vmatpush3.bf16.msra.mxu1 %v1403_v27 }
 0x994   :  { %2274 = vmatmul.mubr.msk.bf16.vlgmr.msra.gmra.mrb[44].mxu0 %vm174_vm5, %v2005_v26  ;;  %2291 = vmatprep.subr.bf16.mxu1 %v2403_v0 }
 0x995   :  { %2287 = vmatprep.mubr.msk.bf16.mxu0 %vm2405_vm2, %v2403_v0  ;;  %2284 = vmatpush3.bf16.msra.mxu0 %v2368_v28 }
 0x996   :  { %2280 = vmatmul.mubr.msk.bf16.vlgmr.msra.gmra.mrb[44].mxu1 %vm174_vm5, %v2005_v26  ;;  %2285 = vmatprep.subr.bf16.mxu0 %v2403_v0 }
 0x997   :  { %2295 = vmatprep.mubr.msk.bf16.mxu1 %vm2405_vm2, %v2403_v0  ;;  %2292 = vmatpush3.bf16.msra.mxu1 %v2369_v29 }
 0x998   :  { %2293 = vmatprep.subr.bf16.mxu1 %v2403_v0 }
 0x999   :  { %2286 = vmatpush3.bf16.msra.mxu0 %v2370_v30 }
 0x99a   :  { %2299 = vmatprep.subr.bf16.mxu0 %v2403_v0 }
 0x99b   :  { %2294 = vmatpush3.bf16.msra.mxu1 %v2371_v31 }
 0x99c   :  { %2305 = vmatprep.subr.bf16.mxu1 %v2403_v0 }
 0xa67   :  { %v1396_v35 = vpop.f32.mrb[44].mxu0 }
 0xa68   :  { %v1452_v37 = vadd.f32 %v1450_v33, %v1396_v35  ;;  %v2275_v38 = vpop.f32.mrb[45].mxu0 }
 0xa69   :  { %v1399_v39 = vpop.f32.mrb[46].mxu0  ;;  %v1439_v40 = vpop.f32.mrb[44].mxu1 }
 0xa6a   :  { %v1460_v41 = vadd.f32 %v2015_v34, %v1452_v37  ;;  %v1453_v43 = vadd.f32 %v1451_v36, %v1439_v40  ;;  %v2276_v44 = vpop.f32.mrb[47].mxu0  ;;  %v2281_v45 = vpop.f32.mrb[45].mxu1  ;;  %v1711_v37 = vld [vmem:[%s2846_s14] sm:$0xf] }
 0xa6b   :  { %v1442_v46 = vpop.f32.mrb[46].mxu1  ;;  %v2040_v40 = vld [vmem:[%s2845_s13] ss:$0 sm:$0xff] }
 0xa6c   :  { %v1461_v48 = vadd.f32 %v2015_v34, %v1453_v43  ;;  %v2282_v51 = vpop.f32.mrb[47].mxu1  ;;  %v1462_v52 = vmax.f32 %v1460_v41, 0.0 }
 0xa6e   :  { %v1463_v53 = vmax.f32 %v1461_v48, 0.0 }
 0xa70   :  { %v1480_v54 = vpack.c.bf16 %v1463_v53, %v1462_v52 }
 0xa72   :  { %2288 = vmatmul.mubr.msk.bf16.vlgmr.msra.gmra.mrb[48].mxu0 %vm308_vm6, %v1480_v54  ;;  %2296 = vmatmul.mubr.msk.bf16.vlgmr.msra.gmra.mrb[48].mxu1 %vm308_vm6, %v1480_v54 }
 0xa73   :  { %2301 = vmatprep.mubr.msk.bf16.mxu0 %vm2405_vm2, %v2403_v0  ;;  %2307 = vmatprep.mubr.msk.bf16.mxu1 %vm2405_vm2, %v2403_v0 }
 0xb45   :  { %v1530_v55 = vpop.f32.mrb[48].mxu0  ;;  %v1583_v56 = vpop.f32.mrb[48].mxu1 }
 0xb46   :  { %v1590_v57 = vpack.c.bf16 %v1583_v56, %v1583_v56  ;;  %v2289_v58 = vpop.f32.mrb[49].mxu0  ;;  %v2297_v59 = vpop.f32.mrb[49].mxu1  ;;  %v1686_v47 = vmul.f32 %v1684_v9, %v1530_v55 }
 0xb47   :  { %v1533_v60 = vpop.f32.mrb[50].mxu0  ;;  %v1586_v61 = vpop.f32.mrb[50].mxu1 }
 0xb48   :  { %v1596_v62 = vsel %vm178_vm4, %v1590_v57, 0  ;;  %v1591_v63 = vpack.c.bf16 %v1586_v61, %v1586_v61  ;;  %v2290_v1 = vpop.f32.mrb[51].mxu0  ;;  %v2298_v2 = vpop.f32.mrb[51].mxu1  ;;  %v1687_v11 = vmul.f32 %v1684_v9, %v1533_v60 }
 0xb49   :  { %2300 = vmatpush3.bf16.msra.mxu0 %v1596_v62 }
 0xb4a   :  { %v1639_v4 = vsel %vm178_vm4, %v1591_v63, 0  ;;  %2311 = vmatprep.subr.bf16.mxu0 %v2403_v0 }
 0xb4b   :  { %2306 = vmatpush3.bf16.msra.mxu1 %v1639_v4 }
 0xb4c   :  { %2302 = vmatmul.mubr.msk.bf16.vlgmr.msra.gmra.mrb[52].mxu0 %vm174_vm5, %v2021_v3  ;;  %2319 = vmatprep.subr.bf16.mxu1 %v2403_v0 }
 0xb4d   :  { %2315 = vmatprep.mubr.msk.bf16.mxu0 %vm2405_vm2, %v2403_v0  ;;  %2312 = vmatpush3.bf16.msra.mxu0 %v2372_v7 }
 0xb4e   :  { %2308 = vmatmul.mubr.msk.bf16.vlgmr.msra.gmra.mrb[52].mxu1 %vm174_vm5, %v2021_v3  ;;  %2313 = vmatprep.subr.bf16.mxu0 %v2403_v0 }
 0xb4f   :  { %2323 = vmatprep.mubr.msk.bf16.mxu1 %vm2405_vm2, %v2403_v0  ;;  %2320 = vmatpush3.bf16.msra.mxu1 %v2373_v42 }
 0xb50   :  { %2321 = vmatprep.subr.bf16.mxu1 %v2403_v0 }
 0xb51   :  { %2314 = vmatpush3.bf16.msra.mxu0 %v2374_v49 }
 0xb52   :  { %2327 = vmatprep.subr.bf16.mxu0 %v2403_v0 }
 0xb53   :  { %2322 = vmatpush3.bf16.msra.mxu1 %v2375_v8 }
 0xb54   :  { %2333 = vmatprep.subr.bf16.mxu1 %v2403_v0 }
 0xc1f   :  { %v1632_v10 = vpop.f32.mrb[52].mxu0 }
 0xc20   :  { %v1688_v12 = vadd.f32 %v1686_v47, %v1632_v10  ;;  %v2303_v13 = vpop.f32.mrb[53].mxu0 }
 0xc21   :  { %v1635_v16 = vpop.f32.mrb[54].mxu0  ;;  %v1675_v17 = vpop.f32.mrb[52].mxu1 }
 0xc22   :  { %v1696_v18 = vadd.f32 %v2031_v50, %v1688_v12  ;;  %v1689_v5 = vadd.f32 %v1687_v11, %v1675_v17  ;;  %v2304_v19 = vpop.f32.mrb[55].mxu0  ;;  %v2309_v20 = vpop.f32.mrb[53].mxu1 }
 0xc23   :  { %v1678_v6 = vpop.f32.mrb[54].mxu1 }
 0xc24   :  { %v1698_v21 = vmax.f32 %v1696_v18, 0.0  ;;  %v1697_v22 = vadd.f32 %v2031_v50, %v1689_v5  ;;  %v2310_v23 = vpop.f32.mrb[55].mxu1 }
 0xc26   :  { %v1699_v24 = vmax.f32 %v1697_v22, 0.0  ;;  %v1700_v25 = vadd.f32 %v1698_v21, %v2729_v14 }
 0xc28   :  { %v1701_v26 = vadd.f32 %v1699_v24, %v2732_v15 }
 0xc2a   :  { %v1713_v27 = vpack.c.bf16 %v1701_v26, %v1700_v25 }
 0xc2c   :  { %2316 = vmatmul.mubr.msk.bf16.vlgmr.msra.gmra.mrb[56].mxu0 %vm308_vm6, %v1713_v27  ;;  %2324 = vmatmul.mubr.msk.bf16.vlgmr.msra.gmra.mrb[56].mxu1 %vm308_vm6, %v1713_v27 }
 0xc2d   :  { %2329 = vmatprep.mubr.msk.bf16.mxu0 %vm2405_vm2, %v2403_v0  ;;  %2335 = vmatprep.mubr.msk.bf16.mxu1 %vm2405_vm2, %v2403_v0  ;;  %v1917_v0 = vpop.permute.xlu1 %1916 }
 0xcff   :  { %v1763_v28 = vpop.f32.mrb[56].mxu0  ;;  %v1816_v29 = vpop.f32.mrb[56].mxu1 }
 0xd00   :  { %v1823_v30 = vpack.c.bf16 %v1816_v29, %v1816_v29  ;;  %v2317_v31 = vpop.f32.mrb[57].mxu0  ;;  %v2325_v32 = vpop.f32.mrb[57].mxu1  ;;  %v1919_v39 = vmul.f32 %v1917_v0, %v1763_v28 }
 0xd01   :  { %v1766_v33 = vpop.f32.mrb[58].mxu0  ;;  %v1819_v14 = vpop.f32.mrb[58].mxu1 }
 0xd02   :  { %v1829_v15 = vsel %vm178_vm4, %v1823_v30, 0  ;;  %v1824_v34 = vpack.c.bf16 %v1819_v14, %v1819_v14  ;;  %v2318_v35 = vpop.f32.mrb[59].mxu0  ;;  %v2326_v36 = vpop.f32.mrb[59].mxu1  ;;  %v1920_v43 = vmul.f32 %v1917_v0, %v1766_v33 }
 0xd03   :  { %2328 = vmatpush3.bf16.msra.mxu0 %v1829_v15 }
 0xd04   :  { %v1872_v38 = vsel %vm178_vm4, %v1824_v34, 0 }
 0xd05   :  { %2334 = vmatpush3.bf16.msra.mxu1 %v1872_v38 }
 0xd06   :  { %2330 = vmatmul.mubr.msk.bf16.vlgmr.msra.gmra.mrb[60].mxu0 %vm174_vm5, %v1711_v37 }
 0xd08   :  { %2336 = vmatmul.mubr.msk.bf16.vlgmr.msra.gmra.mrb[60].mxu1 %vm174_vm5, %v1711_v37 }
 0xdd9   :  { %v1865_v41 = vpop.f32.mrb[60].mxu0 }
 0xdda   :  { %v1921_v44 = vadd.f32 %v1919_v39, %v1865_v41  ;;  %v2331_v45 = vpop.f32.mrb[61].mxu0 }
 0xddb   :  { %v1908_v46 = vpop.f32.mrb[60].mxu1  ;;  %v1868_v48 = vpop.f32.mrb[62].mxu0 }
 0xddc   :  { %v1929_v51 = vadd.f32 %v2040_v40, %v1921_v44  ;;  %v1922_v52 = vadd.f32 %v1920_v43, %v1908_v46  ;;  %v2337_v53 = vpop.f32.mrb[61].mxu1  ;;  %v2332_v54 = vpop.f32.mrb[63].mxu0 }
 0xddd   :  { %v1911_v55 = vpop.f32.mrb[62].mxu1 }
 0xdde   :  { %1931 = vst.msk [vmem:[%s2848_s16] sm:$0xff] %vm76_vm3, %v1929_v51  ;;  %v1930_v56 = vadd.f32 %v2040_v40, %v1922_v52  ;;  %v2338_v57 = vpop.f32.mrb[63].mxu1 }
 0xde0   :  { %1932 = vst.msk [vmem:[%s2848_s16 + $0x8] sm:$0xff] %vm76_vm3, %v1930_v56 }
 0xde1   :  { %1937 = vsyncpa [#allocation3], 1 }

</bundles_post_ra>
